<compile_context>
chip_gen: v7x
topology: tpu7x:2x2x1
jax: 0.10.0
libtpu: 0.0.40
codegen_flags: <defaults>
</compile_context>

<pallas_src>
import math
import jax
import jax.numpy as jnp
from jax.experimental import pallas as pl
from jax.experimental.pallas import tpu as pltpu

# ----------------------------- hyperparameters ------------------------------
BATCH = 2
SEQ = 8
D_MODEL = 32
D_FF = 64
NUM_HEADS = 4
NUM_LAYERS = 2
D_HEAD = D_MODEL // NUM_HEADS
EPS = 1e-6


# ------------------------------ kernel helpers -------------------------------
def _layer_norm(x, gamma, beta):
    mean = jnp.mean(x, axis=-1, keepdims=True)
    var = jnp.mean((x - mean) ** 2, axis=-1, keepdims=True)
    return (x - mean) * jax.lax.rsqrt(var + EPS) * gamma + beta


def encoder_kernel(x_ref,
                   ln1_g_ref, ln1_b_ref,
                   wq_ref, bq_ref, wk_ref, bk_ref, wv_ref, bv_ref,
                   wo_ref, bo_ref,
                   ln2_g_ref, ln2_b_ref,
                   w1_ref, b1_ref, w2_ref, b2_ref,
                   outg_ref, outb_ref,
                   o_ref):
    x = x_ref[0].astype(jnp.float32)                               # (S, D)

    for l in range(NUM_LAYERS):                                    # static unroll: whole stack fused
        # ---- pre-norm + multi-head self-attention (heads as leading batch) ----
        xn = _layer_norm(x, ln1_g_ref[l], ln1_b_ref[l])            # (S, D)
        xh = jnp.broadcast_to(xn[None, :, :], (NUM_HEADS, SEQ, D_MODEL))  # (H, S, D)

        # 1/sqrt(d_head) is already folded into wq/bq (wrapper side).
        q = jnp.einsum("hsd,hdc->hsc", xh, wq_ref[l],
                       preferred_element_type=jnp.float32) + bq_ref[l]    # (H, S, DH)
        k = jnp.einsum("hsd,hdc->hsc", xh, wk_ref[l],
                       preferred_element_type=jnp.float32) + bk_ref[l]
        v = jnp.einsum("hsd,hdc->hsc", xh, wv_ref[l],
                       preferred_element_type=jnp.float32) + bv_ref[l]

        scores = jnp.einsum("hqc,hkc->hqk", q, k,
                            preferred_element_type=jnp.float32)            # (H, S, S)
        scores = scores - jnp.max(scores, axis=-1, keepdims=True)          # stable softmax
        p = jnp.exp(scores)
        p = p * pl.reciprocal(jnp.sum(p, axis=-1, keepdims=True))          # EUP reciprocal
        ctx = jnp.einsum("hqk,hkc->hqc", p, v,
                         preferred_element_type=jnp.float32)               # (H, S, DH)
        attn = jnp.einsum("hqc,hcd->hqd", ctx, wo_ref[l],
                          preferred_element_type=jnp.float32)              # (H, S, D)
        attn = jnp.sum(attn, axis=0) + bo_ref[l]                           # (S, D): head concat + Wo
        # attention_dropout: identity in eval mode
        h1 = x + attn                                                      # residual 1

        # ---- pre-norm + feed-forward ----
        hn = _layer_norm(h1, ln2_g_ref[l], ln2_b_ref[l])
        ff = jnp.dot(hn, w1_ref[l], preferred_element_type=jnp.float32) + b1_ref[l]
        ff = jnp.maximum(ff, 0.0)                                          # ReLU
        ff = jnp.dot(ff, w2_ref[l], preferred_element_type=jnp.float32) + b2_ref[l]
        # feed_forward_dropout: identity in eval mode
        x = h1 + ff                                                        # residual 2

    # ---- final (outputs) LayerNorm ----
    o_ref[0] = _layer_norm(x, outg_ref[...], outb_ref[...]).astype(o_ref.dtype)


# ------------------------------- wrappers ------------------------------------
PARAM_ORDER = ["ln1_g", "ln1_b", "wq", "bq", "wk", "bk", "wv", "bv",
               "wo", "bo", "ln2_g", "ln2_b", "w1", "b1", "w2", "b2"]


def _full_spec(shape):
    # untiled, VMEM-resident parameter block (same block every grid step)
    return pl.BlockSpec(shape, lambda b, _n=len(shape): (0,) * _n)


def pack_params(layer_params):
    """Stack per-layer params along a leading layer axis and pre-split heads
    (wrapper-side: zero in-kernel relayout). Folds 1/sqrt(d_head) into wq/bq."""
    scale = 1.0 / math.sqrt(D_HEAD)

    def split_w(w):   # (D, D) -> (H, D, DH): head h = output columns h*DH:(h+1)*DH
        return w.reshape(D_MODEL, NUM_HEADS, D_HEAD).transpose(1, 0, 2)

    def split_b(b):   # (1, D) -> (H, 1, DH)
        return b.reshape(NUM_HEADS, D_HEAD)[:, None, :]

    return {
        "ln1_g": jnp.stack([p["ln1_g"] for p in layer_params]),            # (L,1,D)
        "ln1_b": jnp.stack([p["ln1_b"] for p in layer_params]),
        "wq": jnp.stack([split_w(p["wq"]) * scale for p in layer_params]),  # (L,H,D,DH)
        "bq": jnp.stack([split_b(p["bq"]) * scale for p in layer_params]),  # (L,H,1,DH)
        "wk": jnp.stack([split_w(p["wk"]) for p in layer_params]),
        "bk": jnp.stack([split_b(p["bk"]) for p in layer_params]),
        "wv": jnp.stack([split_w(p["wv"]) for p in layer_params]),
        "bv": jnp.stack([split_b(p["bv"]) for p in layer_params]),
        "wo": jnp.stack([p["wo"].reshape(NUM_HEADS, D_HEAD, D_MODEL)
                         for p in layer_params]),                          # (L,H,DH,D)
        "bo": jnp.stack([p["bo"] for p in layer_params]),                  # (L,1,D)
        "ln2_g": jnp.stack([p["ln2_g"] for p in layer_params]),
        "ln2_b": jnp.stack([p["ln2_b"] for p in layer_params]),
        "w1": jnp.stack([p["w1"] for p in layer_params]),                  # (L,D,F)
        "b1": jnp.stack([p["b1"] for p in layer_params]),                  # (L,1,F)
        "w2": jnp.stack([p["w2"] for p in layer_params]),                  # (L,F,D)
        "b2": jnp.stack([p["b2"] for p in layer_params]),                  # (L,1,D)
    }


def encoder_forward(x, layer_params, out_gamma, out_beta):
    packed = pack_params(layer_params)
    params = [packed[name] for name in PARAM_ORDER] + [out_gamma, out_beta]

    B, S, D = x.shape
    x_spec = pl.BlockSpec((1, S, D), lambda b: (b, 0, 0))
    in_specs = [x_spec] + [_full_spec(p.shape) for p in params]

    return pl.pallas_call(
        encoder_kernel,
        out_shape=jax.ShapeDtypeStruct((B, S, D), x.dtype),
        grid_spec=pltpu.PrefetchScalarGridSpec(
            num_scalar_prefetch=0,
            grid=(B,),                       # batch axis; parallel for v7x 2-TC sharding
            in_specs=in_specs,
            out_specs=x_spec,
        ),
        compiler_params=pltpu.CompilerParams(
            dimension_semantics=("parallel",),
            vmem_limit_bytes=32 * 1024 * 1024,   # explicit budget (~150 KB actually used)
        ),
    )(x, *params)


# --------------------------- parameter construction ---------------------------
def init_layer_params(key):
    keys = jax.random.split(key, 12)

    def w(k, shape, scale=0.1):
        return (scale * jax.random.normal(k, shape)).astype(jnp.float32)

    return {
        "ln1_g": jnp.ones((1, D_MODEL), jnp.float32),
        "ln1_b": jnp.zeros((1, D_MODEL), jnp.float32),
        "wq": w(keys[0], (D_MODEL, D_MODEL)), "bq": w(keys[1], (1, D_MODEL)),
        "wk": w(keys[2], (D_MODEL, D_MODEL)), "bk": w(keys[3], (1, D_MODEL)),
        "wv": w(keys[4], (D_MODEL, D_MODEL)), "bv": w(keys[5], (1, D_MODEL)),
        "wo": w(keys[6], (D_MODEL, D_MODEL)), "bo": w(keys[7], (1, D_MODEL)),
        "ln2_g": jnp.ones((1, D_MODEL), jnp.float32),
        "ln2_b": jnp.zeros((1, D_MODEL), jnp.float32),
        "w1": w(keys[8], (D_MODEL, D_FF)), "b1": w(keys[9], (1, D_FF)),
        "w2": w(keys[10], (D_FF, D_MODEL)), "b2": w(keys[11], (1, D_MODEL)),
    }


# ------------------------------ pure-JAX reference ----------------------------
def _ref_layer(x, p):
    xn = _layer_norm(x, p["ln1_g"], p["ln1_b"])
    q = xn @ p["wq"] + p["bq"]
    k = xn @ p["wk"] + p["bk"]
    v = xn @ p["wv"] + p["bv"]
    B, S, D = x.shape
    dh = D // NUM_HEADS
    qh = q.reshape(B, S, NUM_HEADS, dh).transpose(0, 2, 1, 3)
    kh = k.reshape(B, S, NUM_HEADS, dh).transpose(0, 2, 1, 3)
    vh = v.reshape(B, S, NUM_HEADS, dh).transpose(0, 2, 1, 3)
    scores = jnp.einsum("bhqd,bhkd->bhqk", qh, kh) / math.sqrt(dh)
    pw = jax.nn.softmax(scores, axis=-1)
    o = jnp.einsum("bhqk,bhkd->bhqd", pw, vh).transpose(0, 2, 1, 3).reshape(B, S, D)
    h1 = x + (o @ p["wo"] + p["bo"])
    hn = _layer_norm(h1, p["ln2_g"], p["ln2_b"])
    ff = jnp.maximum(hn @ p["w1"] + p["b1"], 0.0) @ p["w2"] + p["b2"]
    return h1 + ff


def _ref_encoder(x, layer_params, g, b):
    h = x
    for p in layer_params:
        h = _ref_layer(h, p)
    return _layer_norm(h, g, b)


# ----------------------------------- main -------------------------------------
if __name__ == "__main__":
    key = jax.random.PRNGKey(0)
    k_x, *k_layers = jax.random.split(key, NUM_LAYERS + 1)

    x = jax.random.normal(k_x, (BATCH, SEQ, D_MODEL), dtype=jnp.float32)
    layer_params = [init_layer_params(k) for k in k_layers]
    out_gamma = jnp.ones((1, D_MODEL), jnp.float32)
    out_beta = jnp.zeros((1, D_MODEL), jnp.float32)

    out = encoder_forward(x, layer_params, out_gamma, out_beta)
    out = jax.block_until_ready(out)

    ref = _ref_encoder(x, layer_params, out_gamma, out_beta)
    assert out.shape == (BATCH, SEQ, D_MODEL)
    assert jnp.allclose(out, ref, atol=1e-4, rtol=1e-4), "mismatch vs JAX reference"

    print("KERNEL_OK")
</pallas_src>

<mosaic_0001>
module attributes {stable_mosaic.version = 11 : i64} {
  func.func @encoder_kernel(%arg0: i32, %arg1: memref<1x8x32xf32, #tpu.memory_space<vmem>>, %arg2: memref<2x1x32xf32, #tpu.memory_space<vmem>>, %arg3: memref<2x1x32xf32, #tpu.memory_space<vmem>>, %arg4: memref<2x4x32x8xf32, #tpu.memory_space<vmem>>, %arg5: memref<2x4x1x8xf32, #tpu.memory_space<vmem>>, %arg6: memref<2x4x32x8xf32, #tpu.memory_space<vmem>>, %arg7: memref<2x4x1x8xf32, #tpu.memory_space<vmem>>, %arg8: memref<2x4x32x8xf32, #tpu.memory_space<vmem>>, %arg9: memref<2x4x1x8xf32, #tpu.memory_space<vmem>>, %arg10: memref<2x4x8x32xf32, #tpu.memory_space<vmem>>, %arg11: memref<2x1x32xf32, #tpu.memory_space<vmem>>, %arg12: memref<2x1x32xf32, #tpu.memory_space<vmem>>, %arg13: memref<2x1x32xf32, #tpu.memory_space<vmem>>, %arg14: memref<2x32x64xf32, #tpu.memory_space<vmem>>, %arg15: memref<2x1x64xf32, #tpu.memory_space<vmem>>, %arg16: memref<2x64x32xf32, #tpu.memory_space<vmem>>, %arg17: memref<2x1x32xf32, #tpu.memory_space<vmem>>, %arg18: memref<1x32xf32, #tpu.memory_space<vmem>>, %arg19: memref<1x32xf32, #tpu.memory_space<vmem>>, %arg20: memref<1x8x32xf32, #tpu.memory_space<vmem>>) attributes {dimension_semantics = [#tpu.dimension_semantics<parallel>], iteration_bounds = array<i64: 2>, scalar_prefetch = 0 : i64, scratch_operands = 0 : i64, tpu.core_type = #tpu.core_type<tc>, window_params = [{transform_indices = @transform_0, window_bounds = array<i64: 1, 8, 32>}, {pipeline_mode = #tpu.pipeline_mode<synchronous>, transform_indices = @transform_1, window_bounds = array<i64: 2, 1, 32>}, {pipeline_mode = #tpu.pipeline_mode<synchronous>, transform_indices = @transform_2, window_bounds = array<i64: 2, 1, 32>}, {pipeline_mode = #tpu.pipeline_mode<synchronous>, transform_indices = @transform_3, window_bounds = array<i64: 2, 4, 32, 8>}, {pipeline_mode = #tpu.pipeline_mode<synchronous>, transform_indices = @transform_4, window_bounds = array<i64: 2, 4, 1, 8>}, {pipeline_mode = #tpu.pipeline_mode<synchronous>, transform_indices = @transform_5, window_bounds = array<i64: 2, 4, 32, 8>}, {pipeline_mode = #tpu.pipeline_mode<synchronous>, transform_indices = @transform_6, window_bounds = array<i64: 2, 4, 1, 8>}, {pipeline_mode = #tpu.pipeline_mode<synchronous>, transform_indices = @transform_7, window_bounds = array<i64: 2, 4, 32, 8>}, {pipeline_mode = #tpu.pipeline_mode<synchronous>, transform_indices = @transform_8, window_bounds = array<i64: 2, 4, 1, 8>}, {pipeline_mode = #tpu.pipeline_mode<synchronous>, transform_indices = @transform_9, window_bounds = array<i64: 2, 4, 8, 32>}, {pipeline_mode = #tpu.pipeline_mode<synchronous>, transform_indices = @transform_10, window_bounds = array<i64: 2, 1, 32>}, {pipeline_mode = #tpu.pipeline_mode<synchronous>, transform_indices = @transform_11, window_bounds = array<i64: 2, 1, 32>}, {pipeline_mode = #tpu.pipeline_mode<synchronous>, transform_indices = @transform_12, window_bounds = array<i64: 2, 1, 32>}, {pipeline_mode = #tpu.pipeline_mode<synchronous>, transform_indices = @transform_13, window_bounds = array<i64: 2, 32, 64>}, {pipeline_mode = #tpu.pipeline_mode<synchronous>, transform_indices = @transform_14, window_bounds = array<i64: 2, 1, 64>}, {pipeline_mode = #tpu.pipeline_mode<synchronous>, transform_indices = @transform_15, window_bounds = array<i64: 2, 64, 32>}, {pipeline_mode = #tpu.pipeline_mode<synchronous>, transform_indices = @transform_16, window_bounds = array<i64: 2, 1, 32>}, {pipeline_mode = #tpu.pipeline_mode<synchronous>, transform_indices = @transform_17, window_bounds = array<i64: 1, 32>}, {pipeline_mode = #tpu.pipeline_mode<synchronous>, transform_indices = @transform_18, window_bounds = array<i64: 1, 32>}, {transform_indices = @transform_19, window_bounds = array<i64: 1, 8, 32>}]} {
    %c0 = arith.constant 0 : index
    %c0_0 = arith.constant 0 : index
    %c0_1 = arith.constant 0 : index
    %0 = vector.load %arg1[%c0, %c0_0, %c0_1] : memref<1x8x32xf32, #tpu.memory_space<vmem>>, vector<1x8x32xf32>
    %1 = vector.shape_cast %0 : vector<1x8x32xf32> to vector<8x32xf32>
    %c0_2 = arith.constant 0 : index
    %c0_3 = arith.constant 0 : index
    %c0_4 = arith.constant 0 : index
    %2 = vector.load %arg2[%c0_2, %c0_3, %c0_4] : memref<2x1x32xf32, #tpu.memory_space<vmem>>, vector<1x1x32xf32>
    %3 = vector.shape_cast %2 : vector<1x1x32xf32> to vector<1x32xf32>
    %c0_5 = arith.constant 0 : index
    %c0_6 = arith.constant 0 : index
    %c0_7 = arith.constant 0 : index
    %4 = vector.load %arg3[%c0_5, %c0_6, %c0_7] : memref<2x1x32xf32, #tpu.memory_space<vmem>>, vector<1x1x32xf32>
    %5 = vector.shape_cast %4 : vector<1x1x32xf32> to vector<1x32xf32>
    %cst = arith.constant dense<0.000000e+00> : vector<8xf32>
    %6 = vector.multi_reduction <add>, %1, %cst [1] : vector<8x32xf32> to vector<8xf32>
    %7 = vector.shape_cast %6 : vector<8xf32> to vector<8x1xf32>
    %cst_8 = arith.constant 3.200000e+01 : f32
    %8 = vector.broadcast %cst_8 : f32 to vector<8x1xf32>
    %9 = arith.divf %7, %8 : vector<8x1xf32>
    %10 = vector.broadcast %9 : vector<8x1xf32> to vector<8x32xf32>
    %11 = arith.subf %1, %10 : vector<8x32xf32>
    %12 = arith.mulf %11, %11 : vector<8x32xf32>
    %cst_9 = arith.constant dense<0.000000e+00> : vector<8xf32>
    %13 = vector.multi_reduction <add>, %12, %cst_9 [1] : vector<8x32xf32> to vector<8xf32>
    %14 = vector.shape_cast %13 : vector<8xf32> to vector<8x1xf32>
    %cst_10 = arith.constant 3.200000e+01 : f32
    %15 = vector.broadcast %cst_10 : f32 to vector<8x1xf32>
    %16 = arith.divf %14, %15 : vector<8x1xf32>
    %17 = vector.broadcast %9 : vector<8x1xf32> to vector<8x32xf32>
    %18 = arith.subf %1, %17 : vector<8x32xf32>
    %cst_11 = arith.constant 9.99999997E-7 : f32
    %19 = vector.broadcast %cst_11 : f32 to vector<8x1xf32>
    %20 = arith.addf %16, %19 : vector<8x1xf32>
    %21 = math.rsqrt %20 : vector<8x1xf32>
    %22 = vector.broadcast %21 : vector<8x1xf32> to vector<8x32xf32>
    %23 = arith.mulf %18, %22 : vector<8x32xf32>
    %24 = vector.broadcast %3 : vector<1x32xf32> to vector<8x32xf32>
    %25 = arith.mulf %23, %24 : vector<8x32xf32>
    %26 = vector.broadcast %5 : vector<1x32xf32> to vector<8x32xf32>
    %27 = arith.addf %25, %26 : vector<8x32xf32>
    %28 = vector.shape_cast %27 : vector<8x32xf32> to vector<1x8x32xf32>
    %29 = vector.shape_cast %28 : vector<1x8x32xf32> to vector<1x8x32xf32>
    %30 = vector.broadcast %29 : vector<1x8x32xf32> to vector<4x8x32xf32>
    %c0_12 = arith.constant 0 : index
    %c0_13 = arith.constant 0 : index
    %c0_14 = arith.constant 0 : index
    %c0_15 = arith.constant 0 : index
    %31 = vector.load %arg4[%c0_12, %c0_13, %c0_14, %c0_15] : memref<2x4x32x8xf32, #tpu.memory_space<vmem>>, vector<1x4x32x8xf32>
    %32 = vector.shape_cast %31 : vector<1x4x32x8xf32> to vector<4x32x8xf32>
    "tpu.trace_start"() <{level = 10 : i32, message = "hsd,hdc->hsc"}> : () -> ()
    %cst_16 = arith.constant dense<0.000000e+00> : vector<4x8x8xf32>
    %33 = tpu.matmul %30, %32, %cst_16 {dimension_numbers = #tpu.dot_dimension_numbers<[2], [1], [1], [2], [0, 0, 0, 1, 1, 2], [0], [0]>} : vector<4x8x32xf32>, vector<4x32x8xf32>, vector<4x8x8xf32> -> vector<4x8x8xf32>
    "tpu.trace_stop"() : () -> ()
    %c0_17 = arith.constant 0 : index
    %c0_18 = arith.constant 0 : index
    %c0_19 = arith.constant 0 : index
    %c0_20 = arith.constant 0 : index
    %34 = vector.load %arg5[%c0_17, %c0_18, %c0_19, %c0_20] : memref<2x4x1x8xf32, #tpu.memory_space<vmem>>, vector<1x4x1x8xf32>
    %35 = vector.shape_cast %34 : vector<1x4x1x8xf32> to vector<4x1x8xf32>
    %36 = vector.broadcast %35 : vector<4x1x8xf32> to vector<4x8x8xf32>
    %37 = arith.addf %33, %36 : vector<4x8x8xf32>
    %c0_21 = arith.constant 0 : index
    %c0_22 = arith.constant 0 : index
    %c0_23 = arith.constant 0 : index
    %c0_24 = arith.constant 0 : index
    %38 = vector.load %arg6[%c0_21, %c0_22, %c0_23, %c0_24] : memref<2x4x32x8xf32, #tpu.memory_space<vmem>>, vector<1x4x32x8xf32>
    %39 = vector.shape_cast %38 : vector<1x4x32x8xf32> to vector<4x32x8xf32>
    "tpu.trace_start"() <{level = 10 : i32, message = "hsd,hdc->hsc"}> : () -> ()
    %cst_25 = arith.constant dense<0.000000e+00> : vector<4x8x8xf32>
    %40 = tpu.matmul %30, %39, %cst_25 {dimension_numbers = #tpu.dot_dimension_numbers<[2], [1], [1], [2], [0, 0, 0, 1, 1, 2], [0], [0]>} : vector<4x8x32xf32>, vector<4x32x8xf32>, vector<4x8x8xf32> -> vector<4x8x8xf32>
    "tpu.trace_stop"() : () -> ()
    %c0_26 = arith.constant 0 : index
    %c0_27 = arith.constant 0 : index
    %c0_28 = arith.constant 0 : index
    %c0_29 = arith.constant 0 : index
    %41 = vector.load %arg7[%c0_26, %c0_27, %c0_28, %c0_29] : memref<2x4x1x8xf32, #tpu.memory_space<vmem>>, vector<1x4x1x8xf32>
    %42 = vector.shape_cast %41 : vector<1x4x1x8xf32> to vector<4x1x8xf32>
    %43 = vector.broadcast %42 : vector<4x1x8xf32> to vector<4x8x8xf32>
    %44 = arith.addf %40, %43 : vector<4x8x8xf32>
    %c0_30 = arith.constant 0 : index
    %c0_31 = arith.constant 0 : index
    %c0_32 = arith.constant 0 : index
    %c0_33 = arith.constant 0 : index
    %45 = vector.load %arg8[%c0_30, %c0_31, %c0_32, %c0_33] : memref<2x4x32x8xf32, #tpu.memory_space<vmem>>, vector<1x4x32x8xf32>
    %46 = vector.shape_cast %45 : vector<1x4x32x8xf32> to vector<4x32x8xf32>
    "tpu.trace_start"() <{level = 10 : i32, message = "hsd,hdc->hsc"}> : () -> ()
    %cst_34 = arith.constant dense<0.000000e+00> : vector<4x8x8xf32>
    %47 = tpu.matmul %30, %46, %cst_34 {dimension_numbers = #tpu.dot_dimension_numbers<[2], [1], [1], [2], [0, 0, 0, 1, 1, 2], [0], [0]>} : vector<4x8x32xf32>, vector<4x32x8xf32>, vector<4x8x8xf32> -> vector<4x8x8xf32>
    "tpu.trace_stop"() : () -> ()
    %c0_35 = arith.constant 0 : index
    %c0_36 = arith.constant 0 : index
    %c0_37 = arith.constant 0 : index
    %c0_38 = arith.constant 0 : index
    %48 = vector.load %arg9[%c0_35, %c0_36, %c0_37, %c0_38] : memref<2x4x1x8xf32, #tpu.memory_space<vmem>>, vector<1x4x1x8xf32>
    %49 = vector.shape_cast %48 : vector<1x4x1x8xf32> to vector<4x1x8xf32>
    %50 = vector.broadcast %49 : vector<4x1x8xf32> to vector<4x8x8xf32>
    %51 = arith.addf %47, %50 : vector<4x8x8xf32>
    "tpu.trace_start"() <{level = 10 : i32, message = "hqc,hkc->hqk"}> : () -> ()
    %cst_39 = arith.constant dense<0.000000e+00> : vector<4x8x8xf32>
    %52 = tpu.matmul %37, %44, %cst_39 {dimension_numbers = #tpu.dot_dimension_numbers<[2], [2], [1], [1], [0, 0, 0, 1, 1, 1], [0], [0]>} : vector<4x8x8xf32>, vector<4x8x8xf32>, vector<4x8x8xf32> -> vector<4x8x8xf32>
    "tpu.trace_stop"() : () -> ()
    %cst_40 = arith.constant dense<0xFF800000> : vector<4x8xf32>
    %53 = vector.multi_reduction <maximumf>, %52, %cst_40 [2] : vector<4x8x8xf32> to vector<4x8xf32>
    %54 = vector.shape_cast %53 : vector<4x8xf32> to vector<4x8x1xf32>
    %55 = vector.broadcast %54 : vector<4x8x1xf32> to vector<4x8x8xf32>
    %56 = arith.subf %52, %55 : vector<4x8x8xf32>
    %57 = math.exp %56 : vector<4x8x8xf32>
    %cst_41 = arith.constant dense<0.000000e+00> : vector<4x8xf32>
    %58 = vector.multi_reduction <add>, %57, %cst_41 [2] : vector<4x8x8xf32> to vector<4x8xf32>
    %59 = vector.shape_cast %58 : vector<4x8xf32> to vector<4x8x1xf32>
    %60 = tpu.reciprocal %59 : vector<4x8x1xf32> -> vector<4x8x1xf32>
    %61 = vector.broadcast %60 : vector<4x8x1xf32> to vector<4x8x8xf32>
    %62 = arith.mulf %57, %61 : vector<4x8x8xf32>
    "tpu.trace_start"() <{level = 10 : i32, message = "hqk,hkc->hqc"}> : () -> ()
    %cst_42 = arith.constant dense<0.000000e+00> : vector<4x8x8xf32>
    %63 = tpu.matmul %62, %51, %cst_42 {dimension_numbers = #tpu.dot_dimension_numbers<[2], [1], [1], [2], [0, 0, 0, 1, 1, 2], [0], [0]>} : vector<4x8x8xf32>, vector<4x8x8xf32>, vector<4x8x8xf32> -> vector<4x8x8xf32>
    "tpu.trace_stop"() : () -> ()
    %c0_43 = arith.constant 0 : index
    %c0_44 = arith.constant 0 : index
    %c0_45 = arith.constant 0 : index
    %c0_46 = arith.constant 0 : index
    %64 = vector.load %arg10[%c0_43, %c0_44, %c0_45, %c0_46] : memref<2x4x8x32xf32, #tpu.memory_space<vmem>>, vector<1x4x8x32xf32>
    %65 = vector.shape_cast %64 : vector<1x4x8x32xf32> to vector<4x8x32xf32>
    "tpu.trace_start"() <{level = 10 : i32, message = "hqc,hcd->hqd"}> : () -> ()
    %cst_47 = arith.constant dense<0.000000e+00> : vector<4x8x32xf32>
    %66 = tpu.matmul %63, %65, %cst_47 {dimension_numbers = #tpu.dot_dimension_numbers<[2], [1], [1], [2], [0, 0, 0, 1, 1, 2], [0], [0]>} : vector<4x8x8xf32>, vector<4x8x32xf32>, vector<4x8x32xf32> -> vector<4x8x32xf32>
    "tpu.trace_stop"() : () -> ()
    %cst_48 = arith.constant dense<0.000000e+00> : vector<8x32xf32>
    %67 = vector.multi_reduction <add>, %66, %cst_48 [0] : vector<4x8x32xf32> to vector<8x32xf32>
    %c0_49 = arith.constant 0 : index
    %c0_50 = arith.constant 0 : index
    %c0_51 = arith.constant 0 : index
    %68 = vector.load %arg11[%c0_49, %c0_50, %c0_51] : memref<2x1x32xf32, #tpu.memory_space<vmem>>, vector<1x1x32xf32>
    %69 = vector.shape_cast %68 : vector<1x1x32xf32> to vector<1x32xf32>
    %70 = vector.broadcast %69 : vector<1x32xf32> to vector<8x32xf32>
    %71 = arith.addf %67, %70 : vector<8x32xf32>
    %72 = arith.addf %1, %71 : vector<8x32xf32>
    %c0_52 = arith.constant 0 : index
    %c0_53 = arith.constant 0 : index
    %c0_54 = arith.constant 0 : index
    %73 = vector.load %arg12[%c0_52, %c0_53, %c0_54] : memref<2x1x32xf32, #tpu.memory_space<vmem>>, vector<1x1x32xf32>
    %74 = vector.shape_cast %73 : vector<1x1x32xf32> to vector<1x32xf32>
    %c0_55 = arith.constant 0 : index
    %c0_56 = arith.constant 0 : index
    %c0_57 = arith.constant 0 : index
    %75 = vector.load %arg13[%c0_55, %c0_56, %c0_57] : memref<2x1x32xf32, #tpu.memory_space<vmem>>, vector<1x1x32xf32>
    %76 = vector.shape_cast %75 : vector<1x1x32xf32> to vector<1x32xf32>
    %cst_58 = arith.constant dense<0.000000e+00> : vector<8xf32>
    %77 = vector.multi_reduction <add>, %72, %cst_58 [1] : vector<8x32xf32> to vector<8xf32>
    %78 = vector.shape_cast %77 : vector<8xf32> to vector<8x1xf32>
    %cst_59 = arith.constant 3.200000e+01 : f32
    %79 = vector.broadcast %cst_59 : f32 to vector<8x1xf32>
    %80 = arith.divf %78, %79 : vector<8x1xf32>
    %81 = vector.broadcast %80 : vector<8x1xf32> to vector<8x32xf32>
    %82 = arith.subf %72, %81 : vector<8x32xf32>
    %83 = arith.mulf %82, %82 : vector<8x32xf32>
    %cst_60 = arith.constant dense<0.000000e+00> : vector<8xf32>
    %84 = vector.multi_reduction <add>, %83, %cst_60 [1] : vector<8x32xf32> to vector<8xf32>
    %85 = vector.shape_cast %84 : vector<8xf32> to vector<8x1xf32>
    %cst_61 = arith.constant 3.200000e+01 : f32
    %86 = vector.broadcast %cst_61 : f32 to vector<8x1xf32>
    %87 = arith.divf %85, %86 : vector<8x1xf32>
    %88 = vector.broadcast %80 : vector<8x1xf32> to vector<8x32xf32>
    %89 = arith.subf %72, %88 : vector<8x32xf32>
    %cst_62 = arith.constant 9.99999997E-7 : f32
    %90 = vector.broadcast %cst_62 : f32 to vector<8x1xf32>
    %91 = arith.addf %87, %90 : vector<8x1xf32>
    %92 = math.rsqrt %91 : vector<8x1xf32>
    %93 = vector.broadcast %92 : vector<8x1xf32> to vector<8x32xf32>
    %94 = arith.mulf %89, %93 : vector<8x32xf32>
    %95 = vector.broadcast %74 : vector<1x32xf32> to vector<8x32xf32>
    %96 = arith.mulf %94, %95 : vector<8x32xf32>
    %97 = vector.broadcast %76 : vector<1x32xf32> to vector<8x32xf32>
    %98 = arith.addf %96, %97 : vector<8x32xf32>
    %c0_63 = arith.constant 0 : index
    %c0_64 = arith.constant 0 : index
    %c0_65 = arith.constant 0 : index
    %99 = vector.load %arg14[%c0_63, %c0_64, %c0_65] : memref<2x32x64xf32, #tpu.memory_space<vmem>>, vector<1x32x64xf32>
    %100 = vector.shape_cast %99 : vector<1x32x64xf32> to vector<32x64xf32>
    %cst_66 = arith.constant dense<0.000000e+00> : vector<8x64xf32>
    %101 = tpu.matmul %98, %100, %cst_66 {dimension_numbers = #tpu.dot_dimension_numbers<[1], [0], [0], [1], [0, 0, 1, 1], [], []>} : vector<8x32xf32>, vector<32x64xf32>, vector<8x64xf32> -> vector<8x64xf32>
    %c0_67 = arith.constant 0 : index
    %c0_68 = arith.constant 0 : index
    %c0_69 = arith.constant 0 : index
    %102 = vector.load %arg15[%c0_67, %c0_68, %c0_69] : memref<2x1x64xf32, #tpu.memory_space<vmem>>, vector<1x1x64xf32>
    %103 = vector.shape_cast %102 : vector<1x1x64xf32> to vector<1x64xf32>
    %104 = vector.broadcast %103 : vector<1x64xf32> to vector<8x64xf32>
    %105 = arith.addf %101, %104 : vector<8x64xf32>
    %cst_70 = arith.constant 0.000000e+00 : f32
    %106 = vector.broadcast %cst_70 : f32 to vector<8x64xf32>
    %107 = arith.maximumf %105, %106 : vector<8x64xf32>
    %c0_71 = arith.constant 0 : index
    %c0_72 = arith.constant 0 : index
    %c0_73 = arith.constant 0 : index
    %108 = vector.load %arg16[%c0_71, %c0_72, %c0_73] : memref<2x64x32xf32, #tpu.memory_space<vmem>>, vector<1x64x32xf32>
    %109 = vector.shape_cast %108 : vector<1x64x32xf32> to vector<64x32xf32>
    %cst_74 = arith.constant dense<0.000000e+00> : vector<8x32xf32>
    %110 = tpu.matmul %107, %109, %cst_74 {dimension_numbers = #tpu.dot_dimension_numbers<[1], [0], [0], [1], [0, 0, 1, 1], [], []>} : vector<8x64xf32>, vector<64x32xf32>, vector<8x32xf32> -> vector<8x32xf32>
    %c0_75 = arith.constant 0 : index
    %c0_76 = arith.constant 0 : index
    %c0_77 = arith.constant 0 : index
    %111 = vector.load %arg17[%c0_75, %c0_76, %c0_77] : memref<2x1x32xf32, #tpu.memory_space<vmem>>, vector<1x1x32xf32>
    %112 = vector.shape_cast %111 : vector<1x1x32xf32> to vector<1x32xf32>
    %113 = vector.broadcast %112 : vector<1x32xf32> to vector<8x32xf32>
    %114 = arith.addf %110, %113 : vector<8x32xf32>
    %115 = arith.addf %72, %114 : vector<8x32xf32>
    %c1 = arith.constant 1 : index
    %c0_78 = arith.constant 0 : index
    %c0_79 = arith.constant 0 : index
    %116 = vector.load %arg2[%c1, %c0_78, %c0_79] : memref<2x1x32xf32, #tpu.memory_space<vmem>>, vector<1x1x32xf32>
    %117 = vector.shape_cast %116 : vector<1x1x32xf32> to vector<1x32xf32>
    %c1_80 = arith.constant 1 : index
    %c0_81 = arith.constant 0 : index
    %c0_82 = arith.constant 0 : index
    %118 = vector.load %arg3[%c1_80, %c0_81, %c0_82] : memref<2x1x32xf32, #tpu.memory_space<vmem>>, vector<1x1x32xf32>
    %119 = vector.shape_cast %118 : vector<1x1x32xf32> to vector<1x32xf32>
    %cst_83 = arith.constant dense<0.000000e+00> : vector<8xf32>
    %120 = vector.multi_reduction <add>, %115, %cst_83 [1] : vector<8x32xf32> to vector<8xf32>
    %121 = vector.shape_cast %120 : vector<8xf32> to vector<8x1xf32>
    %cst_84 = arith.constant 3.200000e+01 : f32
    %122 = vector.broadcast %cst_84 : f32 to vector<8x1xf32>
    %123 = arith.divf %121, %122 : vector<8x1xf32>
    %124 = vector.broadcast %123 : vector<8x1xf32> to vector<8x32xf32>
    %125 = arith.subf %115, %124 : vector<8x32xf32>
    %126 = arith.mulf %125, %125 : vector<8x32xf32>
    %cst_85 = arith.constant dense<0.000000e+00> : vector<8xf32>
    %127 = vector.multi_reduction <add>, %126, %cst_85 [1] : vector<8x32xf32> to vector<8xf32>
    %128 = vector.shape_cast %127 : vector<8xf32> to vector<8x1xf32>
    %cst_86 = arith.constant 3.200000e+01 : f32
    %129 = vector.broadcast %cst_86 : f32 to vector<8x1xf32>
    %130 = arith.divf %128, %129 : vector<8x1xf32>
    %131 = vector.broadcast %123 : vector<8x1xf32> to vector<8x32xf32>
    %132 = arith.subf %115, %131 : vector<8x32xf32>
    %cst_87 = arith.constant 9.99999997E-7 : f32
    %133 = vector.broadcast %cst_87 : f32 to vector<8x1xf32>
    %134 = arith.addf %130, %133 : vector<8x1xf32>
    %135 = math.rsqrt %134 : vector<8x1xf32>
    %136 = vector.broadcast %135 : vector<8x1xf32> to vector<8x32xf32>
    %137 = arith.mulf %132, %136 : vector<8x32xf32>
    %138 = vector.broadcast %117 : vector<1x32xf32> to vector<8x32xf32>
    %139 = arith.mulf %137, %138 : vector<8x32xf32>
    %140 = vector.broadcast %119 : vector<1x32xf32> to vector<8x32xf32>
    %141 = arith.addf %139, %140 : vector<8x32xf32>
    %142 = vector.shape_cast %141 : vector<8x32xf32> to vector<1x8x32xf32>
    %143 = vector.shape_cast %142 : vector<1x8x32xf32> to vector<1x8x32xf32>
    %144 = vector.broadcast %143 : vector<1x8x32xf32> to vector<4x8x32xf32>
    %c1_88 = arith.constant 1 : index
    %c0_89 = arith.constant 0 : index
    %c0_90 = arith.constant 0 : index
    %c0_91 = arith.constant 0 : index
    %145 = vector.load %arg4[%c1_88, %c0_89, %c0_90, %c0_91] : memref<2x4x32x8xf32, #tpu.memory_space<vmem>>, vector<1x4x32x8xf32>
    %146 = vector.shape_cast %145 : vector<1x4x32x8xf32> to vector<4x32x8xf32>
    "tpu.trace_start"() <{level = 10 : i32, message = "hsd,hdc->hsc"}> : () -> ()
    %cst_92 = arith.constant dense<0.000000e+00> : vector<4x8x8xf32>
    %147 = tpu.matmul %144, %146, %cst_92 {dimension_numbers = #tpu.dot_dimension_numbers<[2], [1], [1], [2], [0, 0, 0, 1, 1, 2], [0], [0]>} : vector<4x8x32xf32>, vector<4x32x8xf32>, vector<4x8x8xf32> -> vector<4x8x8xf32>
    "tpu.trace_stop"() : () -> ()
    %c1_93 = arith.constant 1 : index
    %c0_94 = arith.constant 0 : index
    %c0_95 = arith.constant 0 : index
    %c0_96 = arith.constant 0 : index
    %148 = vector.load %arg5[%c1_93, %c0_94, %c0_95, %c0_96] : memref<2x4x1x8xf32, #tpu.memory_space<vmem>>, vector<1x4x1x8xf32>
    %149 = vector.shape_cast %148 : vector<1x4x1x8xf32> to vector<4x1x8xf32>
    %150 = vector.broadcast %149 : vector<4x1x8xf32> to vector<4x8x8xf32>
    %151 = arith.addf %147, %150 : vector<4x8x8xf32>
    %c1_97 = arith.constant 1 : index
    %c0_98 = arith.constant 0 : index
    %c0_99 = arith.constant 0 : index
    %c0_100 = arith.constant 0 : index
    %152 = vector.load %arg6[%c1_97, %c0_98, %c0_99, %c0_100] : memref<2x4x32x8xf32, #tpu.memory_space<vmem>>, vector<1x4x32x8xf32>
    %153 = vector.shape_cast %152 : vector<1x4x32x8xf32> to vector<4x32x8xf32>
    "tpu.trace_start"() <{level = 10 : i32, message = "hsd,hdc->hsc"}> : () -> ()
    %cst_101 = arith.constant dense<0.000000e+00> : vector<4x8x8xf32>
    %154 = tpu.matmul %144, %153, %cst_101 {dimension_numbers = #tpu.dot_dimension_numbers<[2], [1], [1], [2], [0, 0, 0, 1, 1, 2], [0], [0]>} : vector<4x8x32xf32>, vector<4x32x8xf32>, vector<4x8x8xf32> -> vector<4x8x8xf32>
    "tpu.trace_stop"() : () -> ()
    %c1_102 = arith.constant 1 : index
    %c0_103 = arith.constant 0 : index
    %c0_104 = arith.constant 0 : index
    %c0_105 = arith.constant 0 : index
    %155 = vector.load %arg7[%c1_102, %c0_103, %c0_104, %c0_105] : memref<2x4x1x8xf32, #tpu.memory_space<vmem>>, vector<1x4x1x8xf32>
    %156 = vector.shape_cast %155 : vector<1x4x1x8xf32> to vector<4x1x8xf32>
    %157 = vector.broadcast %156 : vector<4x1x8xf32> to vector<4x8x8xf32>
    %158 = arith.addf %154, %157 : vector<4x8x8xf32>
    %c1_106 = arith.constant 1 : index
    %c0_107 = arith.constant 0 : index
    %c0_108 = arith.constant 0 : index
    %c0_109 = arith.constant 0 : index
    %159 = vector.load %arg8[%c1_106, %c0_107, %c0_108, %c0_109] : memref<2x4x32x8xf32, #tpu.memory_space<vmem>>, vector<1x4x32x8xf32>
    %160 = vector.shape_cast %159 : vector<1x4x32x8xf32> to vector<4x32x8xf32>
    "tpu.trace_start"() <{level = 10 : i32, message = "hsd,hdc->hsc"}> : () -> ()
    %cst_110 = arith.constant dense<0.000000e+00> : vector<4x8x8xf32>
    %161 = tpu.matmul %144, %160, %cst_110 {dimension_numbers = #tpu.dot_dimension_numbers<[2], [1], [1], [2], [0, 0, 0, 1, 1, 2], [0], [0]>} : vector<4x8x32xf32>, vector<4x32x8xf32>, vector<4x8x8xf32> -> vector<4x8x8xf32>
    "tpu.trace_stop"() : () -> ()
    %c1_111 = arith.constant 1 : index
    %c0_112 = arith.constant 0 : index
    %c0_113 = arith.constant 0 : index
    %c0_114 = arith.constant 0 : index
    %162 = vector.load %arg9[%c1_111, %c0_112, %c0_113, %c0_114] : memref<2x4x1x8xf32, #tpu.memory_space<vmem>>, vector<1x4x1x8xf32>
    %163 = vector.shape_cast %162 : vector<1x4x1x8xf32> to vector<4x1x8xf32>
    %164 = vector.broadcast %163 : vector<4x1x8xf32> to vector<4x8x8xf32>
    %165 = arith.addf %161, %164 : vector<4x8x8xf32>
    "tpu.trace_start"() <{level = 10 : i32, message = "hqc,hkc->hqk"}> : () -> ()
    %cst_115 = arith.constant dense<0.000000e+00> : vector<4x8x8xf32>
    %166 = tpu.matmul %151, %158, %cst_115 {dimension_numbers = #tpu.dot_dimension_numbers<[2], [2], [1], [1], [0, 0, 0, 1, 1, 1], [0], [0]>} : vector<4x8x8xf32>, vector<4x8x8xf32>, vector<4x8x8xf32> -> vector<4x8x8xf32>
    "tpu.trace_stop"() : () -> ()
    %cst_116 = arith.constant dense<0xFF800000> : vector<4x8xf32>
    %167 = vector.multi_reduction <maximumf>, %166, %cst_116 [2] : vector<4x8x8xf32> to vector<4x8xf32>
    %168 = vector.shape_cast %167 : vector<4x8xf32> to vector<4x8x1xf32>
    %169 = vector.broadcast %168 : vector<4x8x1xf32> to vector<4x8x8xf32>
    %170 = arith.subf %166, %169 : vector<4x8x8xf32>
    %171 = math.exp %170 : vector<4x8x8xf32>
    %cst_117 = arith.constant dense<0.000000e+00> : vector<4x8xf32>
    %172 = vector.multi_reduction <add>, %171, %cst_117 [2] : vector<4x8x8xf32> to vector<4x8xf32>
    %173 = vector.shape_cast %172 : vector<4x8xf32> to vector<4x8x1xf32>
    %174 = tpu.reciprocal %173 : vector<4x8x1xf32> -> vector<4x8x1xf32>
    %175 = vector.broadcast %174 : vector<4x8x1xf32> to vector<4x8x8xf32>
    %176 = arith.mulf %171, %175 : vector<4x8x8xf32>
    "tpu.trace_start"() <{level = 10 : i32, message = "hqk,hkc->hqc"}> : () -> ()
    %cst_118 = arith.constant dense<0.000000e+00> : vector<4x8x8xf32>
    %177 = tpu.matmul %176, %165, %cst_118 {dimension_numbers = #tpu.dot_dimension_numbers<[2], [1], [1], [2], [0, 0, 0, 1, 1, 2], [0], [0]>} : vector<4x8x8xf32>, vector<4x8x8xf32>, vector<4x8x8xf32> -> vector<4x8x8xf32>
    "tpu.trace_stop"() : () -> ()
    %c1_119 = arith.constant 1 : index
    %c0_120 = arith.constant 0 : index
    %c0_121 = arith.constant 0 : index
    %c0_122 = arith.constant 0 : index
    %178 = vector.load %arg10[%c1_119, %c0_120, %c0_121, %c0_122] : memref<2x4x8x32xf32, #tpu.memory_space<vmem>>, vector<1x4x8x32xf32>
    %179 = vector.shape_cast %178 : vector<1x4x8x32xf32> to vector<4x8x32xf32>
    "tpu.trace_start"() <{level = 10 : i32, message = "hqc,hcd->hqd"}> : () -> ()
    %cst_123 = arith.constant dense<0.000000e+00> : vector<4x8x32xf32>
    %180 = tpu.matmul %177, %179, %cst_123 {dimension_numbers = #tpu.dot_dimension_numbers<[2], [1], [1], [2], [0, 0, 0, 1, 1, 2], [0], [0]>} : vector<4x8x8xf32>, vector<4x8x32xf32>, vector<4x8x32xf32> -> vector<4x8x32xf32>
    "tpu.trace_stop"() : () -> ()
    %cst_124 = arith.constant dense<0.000000e+00> : vector<8x32xf32>
    %181 = vector.multi_reduction <add>, %180, %cst_124 [0] : vector<4x8x32xf32> to vector<8x32xf32>
    %c1_125 = arith.constant 1 : index
    %c0_126 = arith.constant 0 : index
    %c0_127 = arith.constant 0 : index
    %182 = vector.load %arg11[%c1_125, %c0_126, %c0_127] : memref<2x1x32xf32, #tpu.memory_space<vmem>>, vector<1x1x32xf32>
    %183 = vector.shape_cast %182 : vector<1x1x32xf32> to vector<1x32xf32>
    %184 = vector.broadcast %183 : vector<1x32xf32> to vector<8x32xf32>
    %185 = arith.addf %181, %184 : vector<8x32xf32>
    %186 = arith.addf %115, %185 : vector<8x32xf32>
    %c1_128 = arith.constant 1 : index
    %c0_129 = arith.constant 0 : index
    %c0_130 = arith.constant 0 : index
    %187 = vector.load %arg12[%c1_128, %c0_129, %c0_130] : memref<2x1x32xf32, #tpu.memory_space<vmem>>, vector<1x1x32xf32>
    %188 = vector.shape_cast %187 : vector<1x1x32xf32> to vector<1x32xf32>
    %c1_131 = arith.constant 1 : index
    %c0_132 = arith.constant 0 : index
    %c0_133 = arith.constant 0 : index
    %189 = vector.load %arg13[%c1_131, %c0_132, %c0_133] : memref<2x1x32xf32, #tpu.memory_space<vmem>>, vector<1x1x32xf32>
    %190 = vector.shape_cast %189 : vector<1x1x32xf32> to vector<1x32xf32>
    %cst_134 = arith.constant dense<0.000000e+00> : vector<8xf32>
    %191 = vector.multi_reduction <add>, %186, %cst_134 [1] : vector<8x32xf32> to vector<8xf32>
    %192 = vector.shape_cast %191 : vector<8xf32> to vector<8x1xf32>
    %cst_135 = arith.constant 3.200000e+01 : f32
    %193 = vector.broadcast %cst_135 : f32 to vector<8x1xf32>
    %194 = arith.divf %192, %193 : vector<8x1xf32>
    %195 = vector.broadcast %194 : vector<8x1xf32> to vector<8x32xf32>
    %196 = arith.subf %186, %195 : vector<8x32xf32>
    %197 = arith.mulf %196, %196 : vector<8x32xf32>
    %cst_136 = arith.constant dense<0.000000e+00> : vector<8xf32>
    %198 = vector.multi_reduction <add>, %197, %cst_136 [1] : vector<8x32xf32> to vector<8xf32>
    %199 = vector.shape_cast %198 : vector<8xf32> to vector<8x1xf32>
    %cst_137 = arith.constant 3.200000e+01 : f32
    %200 = vector.broadcast %cst_137 : f32 to vector<8x1xf32>
    %201 = arith.divf %199, %200 : vector<8x1xf32>
    %202 = vector.broadcast %194 : vector<8x1xf32> to vector<8x32xf32>
    %203 = arith.subf %186, %202 : vector<8x32xf32>
    %cst_138 = arith.constant 9.99999997E-7 : f32
    %204 = vector.broadcast %cst_138 : f32 to vector<8x1xf32>
    %205 = arith.addf %201, %204 : vector<8x1xf32>
    %206 = math.rsqrt %205 : vector<8x1xf32>
    %207 = vector.broadcast %206 : vector<8x1xf32> to vector<8x32xf32>
    %208 = arith.mulf %203, %207 : vector<8x32xf32>
    %209 = vector.broadcast %188 : vector<1x32xf32> to vector<8x32xf32>
    %210 = arith.mulf %208, %209 : vector<8x32xf32>
    %211 = vector.broadcast %190 : vector<1x32xf32> to vector<8x32xf32>
    %212 = arith.addf %210, %211 : vector<8x32xf32>
    %c1_139 = arith.constant 1 : index
    %c0_140 = arith.constant 0 : index
    %c0_141 = arith.constant 0 : index
    %213 = vector.load %arg14[%c1_139, %c0_140, %c0_141] : memref<2x32x64xf32, #tpu.memory_space<vmem>>, vector<1x32x64xf32>
    %214 = vector.shape_cast %213 : vector<1x32x64xf32> to vector<32x64xf32>
    %cst_142 = arith.constant dense<0.000000e+00> : vector<8x64xf32>
    %215 = tpu.matmul %212, %214, %cst_142 {dimension_numbers = #tpu.dot_dimension_numbers<[1], [0], [0], [1], [0, 0, 1, 1], [], []>} : vector<8x32xf32>, vector<32x64xf32>, vector<8x64xf32> -> vector<8x64xf32>
    %c1_143 = arith.constant 1 : index
    %c0_144 = arith.constant 0 : index
    %c0_145 = arith.constant 0 : index
    %216 = vector.load %arg15[%c1_143, %c0_144, %c0_145] : memref<2x1x64xf32, #tpu.memory_space<vmem>>, vector<1x1x64xf32>
    %217 = vector.shape_cast %216 : vector<1x1x64xf32> to vector<1x64xf32>
    %218 = vector.broadcast %217 : vector<1x64xf32> to vector<8x64xf32>
    %219 = arith.addf %215, %218 : vector<8x64xf32>
    %cst_146 = arith.constant 0.000000e+00 : f32
    %220 = vector.broadcast %cst_146 : f32 to vector<8x64xf32>
    %221 = arith.maximumf %219, %220 : vector<8x64xf32>
    %c1_147 = arith.constant 1 : index
    %c0_148 = arith.constant 0 : index
    %c0_149 = arith.constant 0 : index
    %222 = vector.load %arg16[%c1_147, %c0_148, %c0_149] : memref<2x64x32xf32, #tpu.memory_space<vmem>>, vector<1x64x32xf32>
    %223 = vector.shape_cast %222 : vector<1x64x32xf32> to vector<64x32xf32>
    %cst_150 = arith.constant dense<0.000000e+00> : vector<8x32xf32>
    %224 = tpu.matmul %221, %223, %cst_150 {dimension_numbers = #tpu.dot_dimension_numbers<[1], [0], [0], [1], [0, 0, 1, 1], [], []>} : vector<8x64xf32>, vector<64x32xf32>, vector<8x32xf32> -> vector<8x32xf32>
    %c1_151 = arith.constant 1 : index
    %c0_152 = arith.constant 0 : index
    %c0_153 = arith.constant 0 : index
    %225 = vector.load %arg17[%c1_151, %c0_152, %c0_153] : memref<2x1x32xf32, #tpu.memory_space<vmem>>, vector<1x1x32xf32>
    %226 = vector.shape_cast %225 : vector<1x1x32xf32> to vector<1x32xf32>
    %227 = vector.broadcast %226 : vector<1x32xf32> to vector<8x32xf32>
    %228 = arith.addf %224, %227 : vector<8x32xf32>
    %229 = arith.addf %186, %228 : vector<8x32xf32>
    %c0_154 = arith.constant 0 : index
    %c0_155 = arith.constant 0 : index
    %230 = vector.load %arg18[%c0_154, %c0_155] : memref<1x32xf32, #tpu.memory_space<vmem>>, vector<1x32xf32>
    %c0_156 = arith.constant 0 : index
    %c0_157 = arith.constant 0 : index
    %231 = vector.load %arg19[%c0_156, %c0_157] : memref<1x32xf32, #tpu.memory_space<vmem>>, vector<1x32xf32>
    %cst_158 = arith.constant dense<0.000000e+00> : vector<8xf32>
    %232 = vector.multi_reduction <add>, %229, %cst_158 [1] : vector<8x32xf32> to vector<8xf32>
    %233 = vector.shape_cast %232 : vector<8xf32> to vector<8x1xf32>
    %cst_159 = arith.constant 3.200000e+01 : f32
    %234 = vector.broadcast %cst_159 : f32 to vector<8x1xf32>
    %235 = arith.divf %233, %234 : vector<8x1xf32>
    %236 = vector.broadcast %235 : vector<8x1xf32> to vector<8x32xf32>
    %237 = arith.subf %229, %236 : vector<8x32xf32>
    %238 = arith.mulf %237, %237 : vector<8x32xf32>
    %cst_160 = arith.constant dense<0.000000e+00> : vector<8xf32>
    %239 = vector.multi_reduction <add>, %238, %cst_160 [1] : vector<8x32xf32> to vector<8xf32>
    %240 = vector.shape_cast %239 : vector<8xf32> to vector<8x1xf32>
    %cst_161 = arith.constant 3.200000e+01 : f32
    %241 = vector.broadcast %cst_161 : f32 to vector<8x1xf32>
    %242 = arith.divf %240, %241 : vector<8x1xf32>
    %243 = vector.broadcast %235 : vector<8x1xf32> to vector<8x32xf32>
    %244 = arith.subf %229, %243 : vector<8x32xf32>
    %cst_162 = arith.constant 9.99999997E-7 : f32
    %245 = vector.broadcast %cst_162 : f32 to vector<8x1xf32>
    %246 = arith.addf %242, %245 : vector<8x1xf32>
    %247 = math.rsqrt %246 : vector<8x1xf32>
    %248 = vector.broadcast %247 : vector<8x1xf32> to vector<8x32xf32>
    %249 = arith.mulf %244, %248 : vector<8x32xf32>
    %250 = vector.broadcast %230 : vector<1x32xf32> to vector<8x32xf32>
    %251 = arith.mulf %249, %250 : vector<8x32xf32>
    %252 = vector.broadcast %231 : vector<1x32xf32> to vector<8x32xf32>
    %253 = arith.addf %251, %252 : vector<8x32xf32>
    %c0_163 = arith.constant 0 : index
    %c0_164 = arith.constant 0 : index
    %c0_165 = arith.constant 0 : index
    %254 = vector.load %arg20[%c0_163, %c0_164, %c0_165] : memref<1x8x32xf32, #tpu.memory_space<vmem>>, vector<1x8x32xf32>
    %255 = vector.shape_cast %254 : vector<1x8x32xf32> to vector<8x32xf32>
    %256 = vector.shape_cast %253 : vector<8x32xf32> to vector<1x8x32xf32>
    tpu.vector_store %arg20[%c0_163, %c0_164, %c0_165], %256 {strides = array<i32>} : memref<1x8x32xf32, #tpu.memory_space<vmem>>, vector<1x8x32xf32>,
    return
  }
  func.func @transform_0(%arg0: i32) -> (i32, i32, i32) {
    %c0_i32 = arith.constant 0 : i32
    %c0_i32_0 = arith.constant 0 : i32
    %c0_i32_1 = arith.constant 0 : i32
    return %arg0, %c0_i32, %c0_i32_0 : i32, i32, i32
  }
  func.func @transform_1(%arg0: i32) -> (i32, i32, i32) {
    %c0_i32 = arith.constant 0 : i32
    %c0_i32_0 = arith.constant 0 : i32
    %c0_i32_1 = arith.constant 0 : i32
    %c0_i32_2 = arith.constant 0 : i32
    return %c0_i32, %c0_i32_0, %c0_i32_1 : i32, i32, i32
  }
  func.func @transform_2(%arg0: i32) -> (i32, i32, i32) {
    %c0_i32 = arith.constant 0 : i32
    %c0_i32_0 = arith.constant 0 : i32
    %c0_i32_1 = arith.constant 0 : i32
    %c0_i32_2 = arith.constant 0 : i32
    return %c0_i32, %c0_i32_0, %c0_i32_1 : i32, i32, i32
  }
  func.func @transform_3(%arg0: i32) -> (i32, i32, i32, i32) {
    %c0_i32 = arith.constant 0 : i32
    %c0_i32_0 = arith.constant 0 : i32
    %c0_i32_1 = arith.constant 0 : i32
    %c0_i32_2 = arith.constant 0 : i32
    %c0_i32_3 = arith.constant 0 : i32
    return %c0_i32, %c0_i32_0, %c0_i32_1, %c0_i32_2 : i32, i32, i32, i32
  }
  func.func @transform_4(%arg0: i32) -> (i32, i32, i32, i32) {
    %c0_i32 = arith.constant 0 : i32
    %c0_i32_0 = arith.constant 0 : i32
    %c0_i32_1 = arith.constant 0 : i32
    %c0_i32_2 = arith.constant 0 : i32
    %c0_i32_3 = arith.constant 0 : i32
    return %c0_i32, %c0_i32_0, %c0_i32_1, %c0_i32_2 : i32, i32, i32, i32
  }
  func.func @transform_5(%arg0: i32) -> (i32, i32, i32, i32) {
    %c0_i32 = arith.constant 0 : i32
    %c0_i32_0 = arith.constant 0 : i32
    %c0_i32_1 = arith.constant 0 : i32
    %c0_i32_2 = arith.constant 0 : i32
    %c0_i32_3 = arith.constant 0 : i32
    return %c0_i32, %c0_i32_0, %c0_i32_1, %c0_i32_2 : i32, i32, i32, i32
  }
  func.func @transform_6(%arg0: i32) -> (i32, i32, i32, i32) {
    %c0_i32 = arith.constant 0 : i32
    %c0_i32_0 = arith.constant 0 : i32
    %c0_i32_1 = arith.constant 0 : i32
    %c0_i32_2 = arith.constant 0 : i32
    %c0_i32_3 = arith.constant 0 : i32
    return %c0_i32, %c0_i32_0, %c0_i32_1, %c0_i32_2 : i32, i32, i32, i32
  }
  func.func @transform_7(%arg0: i32) -> (i32, i32, i32, i32) {
    %c0_i32 = arith.constant 0 : i32
    %c0_i32_0 = arith.constant 0 : i32
    %c0_i32_1 = arith.constant 0 : i32
    %c0_i32_2 = arith.constant 0 : i32
    %c0_i32_3 = arith.constant 0 : i32
    return %c0_i32, %c0_i32_0, %c0_i32_1, %c0_i32_2 : i32, i32, i32, i32
  }
  func.func @transform_8(%arg0: i32) -> (i32, i32, i32, i32) {
    %c0_i32 = arith.constant 0 : i32
    %c0_i32_0 = arith.constant 0 : i32
    %c0_i32_1 = arith.constant 0 : i32
    %c0_i32_2 = arith.constant 0 : i32
    %c0_i32_3 = arith.constant 0 : i32
    return %c0_i32, %c0_i32_0, %c0_i32_1, %c0_i32_2 : i32, i32, i32, i32
  }
  func.func @transform_9(%arg0: i32) -> (i32, i32, i32, i32) {
    %c0_i32 = arith.constant 0 : i32
    %c0_i32_0 = arith.constant 0 : i32
    %c0_i32_1 = arith.constant 0 : i32
    %c0_i32_2 = arith.constant 0 : i32
    %c0_i32_3 = arith.constant 0 : i32
    return %c0_i32, %c0_i32_0, %c0_i32_1, %c0_i32_2 : i32, i32, i32, i32
  }
  func.func @transform_10(%arg0: i32) -> (i32, i32, i32) {
    %c0_i32 = arith.constant 0 : i32
    %c0_i32_0 = arith.constant 0 : i32
    %c0_i32_1 = arith.constant 0 : i32
    %c0_i32_2 = arith.constant 0 : i32
    return %c0_i32, %c0_i32_0, %c0_i32_1 : i32, i32, i32
  }
  func.func @transform_11(%arg0: i32) -> (i32, i32, i32) {
    %c0_i32 = arith.constant 0 : i32
    %c0_i32_0 = arith.constant 0 : i32
    %c0_i32_1 = arith.constant 0 : i32
    %c0_i32_2 = arith.constant 0 : i32
    return %c0_i32, %c0_i32_0, %c0_i32_1 : i32, i32, i32
  }
  func.func @transform_12(%arg0: i32) -> (i32, i32, i32) {
    %c0_i32 = arith.constant 0 : i32
    %c0_i32_0 = arith.constant 0 : i32
    %c0_i32_1 = arith.constant 0 : i32
    %c0_i32_2 = arith.constant 0 : i32
    return %c0_i32, %c0_i32_0, %c0_i32_1 : i32, i32, i32
  }
  func.func @transform_13(%arg0: i32) -> (i32, i32, i32) {
    %c0_i32 = arith.constant 0 : i32
    %c0_i32_0 = arith.constant 0 : i32
    %c0_i32_1 = arith.constant 0 : i32
    %c0_i32_2 = arith.constant 0 : i32
    return %c0_i32, %c0_i32_0, %c0_i32_1 : i32, i32, i32
  }
  func.func @transform_14(%arg0: i32) -> (i32, i32, i32) {
    %c0_i32 = arith.constant 0 : i32
    %c0_i32_0 = arith.constant 0 : i32
    %c0_i32_1 = arith.constant 0 : i32
    %c0_i32_2 = arith.constant 0 : i32
    return %c0_i32, %c0_i32_0, %c0_i32_1 : i32, i32, i32
  }
  func.func @transform_15(%arg0: i32) -> (i32, i32, i32) {
    %c0_i32 = arith.constant 0 : i32
    %c0_i32_0 = arith.constant 0 : i32
    %c0_i32_1 = arith.constant 0 : i32
    %c0_i32_2 = arith.constant 0 : i32
    return %c0_i32, %c0_i32_0, %c0_i32_1 : i32, i32, i32
  }
  func.func @transform_16(%arg0: i32) -> (i32, i32, i32) {
    %c0_i32 = arith.constant 0 : i32
    %c0_i32_0 = arith.constant 0 : i32
    %c0_i32_1 = arith.constant 0 : i32
    %c0_i32_2 = arith.constant 0 : i32
    return %c0_i32, %c0_i32_0, %c0_i32_1 : i32, i32, i32
  }
  func.func @transform_17(%arg0: i32) -> (i32, i32) {
    %c0_i32 = arith.constant 0 : i32
    %c0_i32_0 = arith.constant 0 : i32
    %c0_i32_1 = arith.constant 0 : i32
    return %c0_i32, %c0_i32_0 : i32, i32
  }
  func.func @transform_18(%arg0: i32) -> (i32, i32) {
    %c0_i32 = arith.constant 0 : i32
    %c0_i32_0 = arith.constant 0 : i32
    %c0_i32_1 = arith.constant 0 : i32
    return %c0_i32, %c0_i32_0 : i32, i32
  }
  func.func @transform_19(%arg0: i32) -> (i32, i32, i32) {
    %c0_i32 = arith.constant 0 : i32
    %c0_i32_0 = arith.constant 0 : i32
    %c0_i32_1 = arith.constant 0 : i32
    return %arg0, %c0_i32, %c0_i32_0 : i32, i32, i32
  }
}

</mosaic_0001>

<bundles_post_ra>
// kernel: tpu_custom_call.1
= control target key start
LH: loop header
LB: loop body
LE: loop exit
PB: predicated region body
PF: predicated region fallthrough
CT: control target
= control target key end

     0   :  { %s7244_s0 = inlined_call_operand.vmem [shape: f32[2,8,32], index: 0, kind: input, shape index: {}]   ;;  %s7245_s1 = inlined_call_operand.vmem [shape: f32[2,1,32], index: 1, kind: input, shape index: {}]   ;;  %s7246_s2 = inlined_call_operand.vmem [shape: f32[2,1,32], index: 2, kind: input, shape index: {}]   ;;  %s7247_s3 = inlined_call_operand.vmem [shape: f32[2,4,32,8], index: 3, kind: input, shape index: {}]   ;;  %s7248_s4 = inlined_call_operand.vmem [shape: f32[2,4,1,8], index: 4, kind: input, shape index: {}]   ;;  %s7249_s5 = inlined_call_operand.vmem [shape: f32[2,4,32,8], index: 5, kind: input, shape index: {}]   ;;  %s7250_s6 = inlined_call_operand.vmem [shape: f32[2,4,1,8], index: 6, kind: input, shape index: {}]   ;;  %s7251_s7 = inlined_call_operand.vmem [shape: f32[2,4,32,8], index: 7, kind: input, shape index: {}]   ;;  %s7252_s8 = inlined_call_operand.vmem [shape: f32[2,4,1,8], index: 8, kind: input, shape index: {}]   ;;  %s7253_s9 = inlined_call_operand.vmem [shape: f32[2,4,8,32], index: 9, kind: input, shape index: {}]   ;;  %s7254_s10 = inlined_call_operand.vmem [shape: f32[2,1,32], index: 10, kind: input, shape index: {}]   ;;  %s7255_s11 = inlined_call_operand.vmem [shape: f32[2,1,32], index: 11, kind: input, shape index: {}]   ;;  %s7256_s12 = inlined_call_operand.vmem [shape: f32[2,1,32], index: 12, kind: input, shape index: {}]   ;;  %s7257_s13 = inlined_call_operand.vmem [shape: f32[2,32,64], index: 13, kind: input, shape index: {}]   ;;  %s7258_s14 = inlined_call_operand.vmem [shape: f32[2,1,64], index: 14, kind: input, shape index: {}]   ;;  %s7259_s15 = inlined_call_operand.vmem [shape: f32[2,64,32], index: 15, kind: input, shape index: {}]   ;;  %s7260_s16 = inlined_call_operand.vmem [shape: f32[2,1,32], index: 16, kind: input, shape index: {}]   ;;  %s7261_s17 = inlined_call_operand.vmem [shape: f32[1,32], index: 17, kind: input, shape index: {}]   ;;  %s7262_s18 = inlined_call_operand.vmem [shape: f32[1,32], index: 18, kind: input, shape index: {}]   ;;  %s7263_s19 = inlined_call_operand.hbm [shape: f32[2,8,32], index: 19, kind: output, shape index: {}]  }
   0x1   :  { %7275 = sst [smem:[#allocation11_spill]] %s7244_s0 }
   0x2   :  { %7276 = sst [smem:[#allocation12_spill]] %s7245_s1 }
   0x3   :  { %7277 = sst [smem:[#allocation13_spill]] %s7246_s2 }
   0x4   :  { %7278 = sst [smem:[#allocation14_spill]] %s7247_s3 }
   0x5   :  { %7279 = sst [smem:[#allocation15_spill]] %s7248_s4 }
   0x6   :  { %7280 = sst [smem:[#allocation16_spill]] %s7249_s5 }
   0x7   :  { %7281 = sst [smem:[#allocation17_spill]] %s7262_s18 }
   0x8   :  { %7282 = sst [smem:[#allocation18_spill]] %s7263_s19 }
   0x9   :  { %24 = vsyncpa [#allocation3], 0 }
   0xa   :  { %26 = vsyncpa [#allocation3 + $0x1], 0  ;;  %s6305_s0 = smov 0   ;;  %s6307_s30 = smov 0  }
   0xb   :  { %s6309_s20 = smov 0   ;;  %s6311_s21 = smov 0  }
   0xc LB: > { %7283 = sst [smem:[#allocation5_spill]] %s6187_s0  ;;  %s6326_s1 = sadd.s32 4294967295, %s6199_s21   ;;  %s6199_s21 = sphi %s6311_s21, %s7304_s21   ;;  %s6195_s20 = sphi %s6309_s20, %s7306_s20   ;;  %s6191_s30 = sphi %s6307_s30, %s7308_s30   ;;  %s6187_s0 = sphi %s6305_s0, %s7307_s0  }
   0xd   : > { %7284 = sst [smem:[#allocation6_spill]] %s6195_s20  ;;  %s5040_s22 = sadd.s32 4294967294, %s6199_s21  }
   0xe   : > { %7285 = sst [smem:[#allocation7_spill]] %s6199_s21  ;;  %s6330_s2 = sadd.s32 1, %s6199_s21  }
   0xf   : > { %7286 = sst [smem:[#allocation8_spill]] %s6330_s2  ;;  %s443_s23 = sadd.s32 1, %s6195_s20 }
  0x10   : > { %s440_s24 = ssub.s32 %s6199_s21, %s6330_s2  ;;  %p453_p0 = scmp.ne.s32.totalorder %s6195_s20, %s6191_s30 }
  0x11   : > { %p441_p1 = scmp.eq.s32.totalorder %s440_s24, 0  ;;  %p454_p2 = scmp.eq.s32.totalorder %s6326_s1, 1 }
  0x12   : > { %p459_p3 = scmp.ne.s32.totalorder %s6191_s30, %s6187_s0  ;;  %p460_p4 = scmp.eq.s32.totalorder %s5040_s22, 1 }
  0x13   : > { %s6341_s25 = scalar_select %p441_p1, %s6195_s20, %s443_s23  }
  0x14   : > { %p6343_p5 = por %p454_p2, %p453_p0  ;;  %p6347_p6 = por %p460_p4, %p459_p3 }
  0x15   : > { %7287 = sst [smem:[#allocation9_spill]] %s6341_s25  ;;  %p5043_p7 = scmp.ge.s32.totalorder %s6199_s21, 1 }
  0x16   : > { %s7289_s26 = scalar_select %p6347_p6, 1, 0 }
  0x17   : > { %p539_p8 = scmp.lt.s32.totalorder %s6199_s21, 3 }
  0x18   : > { %7290 = sst [smem:[#allocation10_spill]] %s7289_s26 }
  0x19   : > { %p540_p9 = pnand %p5043_p7, %p539_p8 }
  0x1a   : > { %p594_p10 = scmp.lt.s32.totalorder (!%p540_p9), %s6326_s1, 1  ;;  %vm601_vm0 = vcmask (!%p540_p9), 261120   ;;  %s7291_s23 = sld [smem:[#allocation11_spill]] (!%p540_p9)  ;;  %v6201_v12 = vmov (!%p540_p9), 0.0|0.0   ;;  %vm6202_vm1 = vmmov (!%p540_p9), 0   ;;  %v6203_v20 = vmov (!%p540_p9), 0.0  }
  0x1b   : > { %543 = sbr.rel (%p540_p9) target bundleno = 4889 (0x1319), region = 96  ;;  %s7292_s20 = sld [smem:[#allocation14_spill]] (!%p540_p9)  ;;  %5873 = vmatprep.subr.bf16.mxu0 (!%p540_p9), %v6201_v12  ;;  %5879 = vmatprep.subr.bf16.mxu1 (!%p540_p9), %v6201_v12  ;;  %vm1605_vm2 = vcmask (!%p540_p9), 64512   ;;  %vm2687_vm3 = vcmask (!%p540_p9), 523264  }
  0x1c   : > { %5437 = vmatprep.mubr.msk.f32.mxu0 (!%p540_p9), %vm6202_vm1, %v6203_v20  ;;  %5448 = vmatprep.mubr.msk.f32.mxu1 (!%p540_p9), %vm6202_vm1, %v6203_v20  ;;  %s7294_s25 = sld [smem:[#allocation12_spill]] (!%p540_p9)  ;;  %s7297_s5 = sld [smem:[#allocation16_spill]] (!%p540_p9) }
  0x1d   : > { %s7298_s4 = sld [smem:[#allocation15_spill]] (!%p540_p9)  ;;  %s591_s19 = sand.u32 (!%p540_p9), 1, %s6191_s30  }
  0x1e   : > { %s7299_s26 = sld [smem:[#allocation17_spill]] (!%p540_p9) }
  0x21   : > { %s7293_s2 = smov (!%p540_p9), %s7292_s20  ;;  %v630_v7 = vld [vmem:[%s7292_s20] sm:$0xff] (!%p540_p9)  ;;  %s7295_s20 = sld [smem:[#allocation13_spill]] (!%p540_p9) }
  0x22   : > { %s595_s27 = scalar_select %p594_p10, %s6326_s1, 1  ;;  %v631_v8 = vld [vmem:[%s7293_s2 + $0x8] sm:$0xff]  ;;  %v634_v9 = vld [vmem:[%s7293_s2 + $0x20] sm:$0xff]  ;;  %v632_v14 = vld [vmem:[%s7293_s2 + $0x10] sm:$0xff] }
  0x23   : > { %v5874_v10 = vpack.c.bf16 %v631_v8, %v630_v7  ;;  %v635_v11 = vld [vmem:[%s7293_s2 + $0x28] sm:$0xff]  ;;  %v633_v15 = vld [vmem:[%s7293_s2 + $0x18] sm:$0xff]  ;;  %v636_v16 = vld [vmem:[%s7293_s2 + $0x30] sm:$0xff] }
  0x24   : > { %s5045_s28 = sshll.u32 %s595_s27, 3  ;;  %v5880_v13 = vpack.c.bf16 %v635_v11, %v634_v9  ;;  %v5877_v17 = vpack.c.bf16 %v633_v15, %v632_v14  ;;  %v637_v18 = vld [vmem:[%s7293_s2 + $0x38] sm:$0xff]  ;;  %v5046_v25 = vld [vmem:[%s7294_s25] ss:$0 sm:$0xff]  ;;  %v639_v28 = vld [vmem:[%s7293_s2 + $0x48] sm:$0xff] }
  0x25   : > { %s597_s24 = scalar_lea.vmem %s7291_s23, %s5045_s28  ;;  %5875 = vmatpush3.bf16.msra.mxu0 %v5874_v10  ;;  %v5883_v19 = vpack.c.bf16 %v637_v18, %v636_v16  ;;  %v638_v26 = vld [vmem:[%s7293_s2 + $0x40] sm:$0xff]  ;;  %v643_v30 = vld [vmem:[%s7293_s2 + $0x68] sm:$0xff]  ;;  %v640_v35 = vld [vmem:[%s7293_s2 + $0x50] sm:$0xff]  ;;  %s5044_s23 = sshll.u32 %s591_s19, 3 }
  0x26   : > { %v6358_v0 = vld [vmem:[%s597_s24] sm:$0xff]  ;;  %5881 = vmatpush3.bf16.msra.mxu1 %v5880_v13  ;;  %5876 = vmatprep.subr.bf16.mxu0 %v6201_v12  ;;  %v5886_v33 = vpack.c.bf16 %v639_v28, %v638_v26  ;;  %v641_v37 = vld [vmem:[%s7293_s2 + $0x58] sm:$0xff]  ;;  %v644_v38 = vld [vmem:[%s7293_s2 + $0x70] sm:$0xff]  ;;  %s5230_s28 = sshll.u32 %s6326_s1, 7  ;;  %s593_s22 = scalar_lea.vmem [#allocation2], %s5044_s23 }
  0x27   : > { %v602_v1 = vsel %vm601_vm0, %v6358_v0, 0.0  ;;  %5882 = vmatprep.subr.bf16.mxu1 %v6201_v12  ;;  %v642_v29 = vld [vmem:[%s7293_s2 + $0x60] sm:$0xff]  ;;  %s7296_s18 = smov %s7295_s20  ;;  %v645_v39 = vld [vmem:[%s7293_s2 + $0x78] sm:$0xff]  ;;  %v5889_v40 = vpack.c.bf16 %v641_v37, %v640_v35  ;;  %v958_v43 = vld [vmem:[%s7297_s5 + $0x8] sm:$0xff]  ;;  %s4981_s0 = sshll.u32 %s593_s22, 4  ;;  %s7203_s0 = int_to_ptr.vmem [resolvable:$true] %s4981_s0 }
  0x28   : > { %603 = vadd.xlane.f32.xlu0 %v602_v1  ;;  %v5047_v31 = vld [vmem:[%s7295_s20] ss:$0 sm:$0xff]  ;;  %v5892_v34 = vpack.c.bf16 %v643_v30, %v642_v29  ;;  %v5895_v41 = vpack.c.bf16 %v645_v39, %v644_v38  ;;  %v962_v45 = vld [vmem:[%s7297_s5 + $0x28] sm:$0xff]  ;;  %v959_v48 = vld [vmem:[%s7297_s5 + $0x10] sm:$0xff]  ;;  %s4968_s24 = scalar_lea.sflag [#allocation3], %s591_s19  ;;  %s6137_s20 = scalar_lea.vmem %s7203_s0, 128 }
  0x29   : > { %5878 = vmatpush3.bf16.msra.mxu0 %v5877_v17  ;;  %v957_v42 = vld [vmem:[%s7297_s5] sm:$0xff]  ;;  %v960_v49 = vld [vmem:[%s7297_s5 + $0x18] sm:$0xff]  ;;  %v963_v50 = vld [vmem:[%s7297_s5 + $0x30] sm:$0xff]  ;;  %p6138_p11 = scmp.ne.s32.totalorder %s7203_s0, %s6137_s20  ;;  %s6204_s1 = smov [#allocation2]  }
  0x2a   : > { %5884 = vmatpush3.bf16.msra.mxu1 %v5883_v19  ;;  %5885 = vmatprep.subr.bf16.mxu0 %v6201_v12  ;;  %v961_v44 = vld [vmem:[%s7297_s5 + $0x20] sm:$0xff]  ;;  %v5898_v46 = vpack.c.bf16 %v958_v43, %v957_v42  ;;  %v964_v51 = vld [vmem:[%s7297_s5 + $0x38] sm:$0xff]  ;;  %v5901_v52 = vpack.c.bf16 %v960_v49, %v959_v48  ;;  %v966_v55 = vld [vmem:[%s7297_s5 + $0x48] sm:$0xff]  ;;  %s6141_s23 = sshll.u32 %s6204_s1, 4  ;;  %s6142_s23 = int_to_ptr.vmem [resolvable:$false] %s6141_s23 }
  0x2b   : > { %5891 = vmatprep.subr.bf16.mxu1 %v6201_v12  ;;  %v5904_v47 = vpack.c.bf16 %v962_v45, %v961_v44  ;;  %v5907_v53 = vpack.c.bf16 %v964_v51, %v963_v50  ;;  %v965_v54 = vld [vmem:[%s7297_s5 + $0x40] sm:$0xff]  ;;  %v970_v57 = vld [vmem:[%s7297_s5 + $0x68] sm:$0xff]  ;;  %v967_v60 = vld [vmem:[%s7297_s5 + $0x50] sm:$0xff]  ;;  %p6139_p12 = pnand %p6138_p11, %p6343_p5  ;;  %s6143_s27 = scalar_lea.vmem %s6142_s23, 256 }
  0x2c   : > { %v969_v56 = vld [vmem:[%s7297_s5 + $0x60] sm:$0xff]  ;;  %v5910_v58 = vpack.c.bf16 %v966_v55, %v965_v54  ;;  %v968_v61 = vld [vmem:[%s7297_s5 + $0x58] sm:$0xff]  ;;  %v971_v62 = vld [vmem:[%s7297_s5 + $0x70] sm:$0xff]  ;;  %p6144_p0 = scmp.lt.s32.totalorder %s7203_s0, %s6142_s23  ;;  %p6145_p1 = scmp.lt.s32.totalorder %s6143_s27, %s6137_s20 }
  0x2d   : > { %v5916_v59 = vpack.c.bf16 %v970_v57, %v969_v56  ;;  %v972_v63 = vld [vmem:[%s7297_s5 + $0x78] sm:$0xff]  ;;  %v5913_v1 = vpack.c.bf16 %v968_v61, %v967_v60  ;;  %v1283_v9 = vld [vmem:[%s7251_s7 + $0x10] sm:$0xff]  ;;  %v1289_v16 = vld [vmem:[%s7251_s7 + $0x40] sm:$0xff]  ;;  %p6140_p13 = pneg %p6139_p12 }
  0x2e   : > { %v1284_v10 = vld [vmem:[%s7251_s7 + $0x18] sm:$0xff]  ;;  %v1287_v11 = vld [vmem:[%s7251_s7 + $0x30] sm:$0xff]  ;;  %v1290_v17 = vld [vmem:[%s7251_s7 + $0x48] sm:$0xff]  ;;  %p6146_p2 = por %p6145_p1, %p6144_p0 }
  0x2f   : > { %v1288_v13 = vld [vmem:[%s7251_s7 + $0x38] sm:$0xff]  ;;  %v5925_v14 = vpack.c.bf16 %v1284_v10, %v1283_v9  ;;  %v1293_v18 = vld [vmem:[%s7251_s7 + $0x60] sm:$0xff]  ;;  %v1294_v19 = vld [vmem:[%s7251_s7 + $0x68] sm:$0xff] }
  0x30   : > { %v5931_v15 = vpack.c.bf16 %v1288_v13, %v1287_v11  ;;  %v1296_v26 = vld [vmem:[%s7251_s7 + $0x78] sm:$0xff]  ;;  %v5056_v38 = vld [vmem:[%s7250_s6] ss:$0 sm:$0xff]  ;;  %v5057_v44 = vld [vmem:[%s7250_s6 + $0x1] ss:$0 sm:$0xff]  ;;  %p6147_p3 = pnand %p6146_p2, %p6140_p13 }
  0x31   : > { %v5058_v48 = vld [vmem:[%s7250_s6 + $0x2] ss:$0 sm:$0xff]  ;;  %v5059_v49 = vld [vmem:[%s7250_s6 + $0x3] ss:$0 sm:$0xff]  ;;  %v5064_v61 = vld [vmem:[%s7252_s8] ss:$0 sm:$0xff] }
  0x32   : > { %v5051_v54 = vld [vmem:[%s7298_s4 + $0x3] ss:$0 sm:$0xff] }
  0xb5   : > { %v604_v2 = vpop.xlane.xlu0 %603 }
  0xb6   : > { %v606_v3 = vmul.f32 0.03125, %v604_v2  ;;  %v5919_v2 = vpack.c.bf16 %v972_v63, %v971_v62  ;;  %v5065_v62 = vld [vmem:[%s7252_s8 + $0x1] ss:$0 sm:$0xff] }
  0xb8   : > { %v607_v4 = vsub.f32 %v6358_v0, %v606_v3  ;;  %v1281_v3 = vld [vmem:[%s7251_s7] sm:$0xff] }
  0xba   : > { %v608_v5 = vmul.f32 %v607_v4, %v607_v4 }
  0xbc   : > { %v609_v6 = vsel %vm601_vm0, %v608_v5, 0.0  ;;  %v1285_v5 = vld [vmem:[%s7251_s7 + $0x20] sm:$0xff] }
  0xbd   : > { %610 = vadd.xlane.f32.xlu0 %v609_v6  ;;  %v1286_v6 = vld [vmem:[%s7251_s7 + $0x28] sm:$0xff] }
  0xbe   : > { %v5928_v8 = vpack.c.bf16 %v1286_v6, %v1285_v5 }
 0x14a   : > { %v611_v21 = vpop.xlane.xlu0 %610 }
 0x14b   : > { %v612_v22 = vmul.f32 0.03125, %v611_v21  ;;  %v5934_v21 = vpack.c.bf16 %v1290_v17, %v1289_v16 }
 0x14d   : > { %v613_v23 = vadd.f32 1e-06, %v612_v22  ;;  %v5940_v22 = vpack.c.bf16 %v1294_v19, %v1293_v18 }
 0x14f   : > { %6095 = vrsqrt.f32 %v613_v23  ;;  %v1291_v23 = vld [vmem:[%s7251_s7 + $0x50] sm:$0xff] }
 0x159   : > { %v6096_v24 = vpop.eup %6095 }
 0x15a   : > { %v615_v27 = vmul.f32 %v6096_v24, %v607_v4  ;;  %v1282_v4 = vld [vmem:[%s7251_s7 + $0x8] sm:$0xff]  ;;  %v1292_v24 = vld [vmem:[%s7251_s7 + $0x58] sm:$0xff] }
 0x15b   : > { %v5922_v7 = vpack.c.bf16 %v1282_v4, %v1281_v3 }
 0x15c   : > { %v622_v32 = vmul.f32 %v5046_v25, %v615_v27  ;;  %v1295_v25 = vld [vmem:[%s7251_s7 + $0x70] sm:$0xff]  ;;  %v5937_v27 = vpack.c.bf16 %v1292_v24, %v1291_v23 }
 0x15d   : > { %v5943_v28 = vpack.c.bf16 %v1296_v26, %v1295_v25 }
 0x15e   : > { %v6419_v36 = vadd.f32 %v5047_v31, %v622_v32 }
 0x160   : > { %5438 = vmatmul.mubr.msk.f32.vlgmr.msra.gmra.mrb[0].mxu0 %vm601_vm0, %v6419_v36  ;;  %5449 = vmatmul.mubr.msk.f32.vlgmr.msra.gmra.mrb[0].mxu1 %vm601_vm0, %v6419_v36 }
 0x161   : > { %5887 = vmatpush3.bf16.msra.mxu0 %v5886_v33  ;;  %5893 = vmatpush3.bf16.msra.mxu1 %v5892_v34 }
 0x162   : > { %5888 = vmatprep.subr.bf16.mxu0 %v6201_v12  ;;  %5894 = vmatprep.subr.bf16.mxu1 %v6201_v12 }
 0x163   : > { %5459 = vmatprep.mubr.msk.f32.mxu0 %vm6202_vm1, %v6203_v20  ;;  %5470 = vmatprep.mubr.msk.f32.mxu1 %vm6202_vm1, %v6203_v20 }
 0x165   : > { %5890 = vmatpush3.bf16.msra.mxu0 %v5889_v40  ;;  %5896 = vmatpush3.bf16.msra.mxu1 %v5895_v41  ;;  %v5048_v40 = vld [vmem:[%s7298_s4] ss:$0 sm:$0xff] }
 0x166   : > { %5897 = vmatprep.subr.bf16.mxu0 %v6201_v12  ;;  %5903 = vmatprep.subr.bf16.mxu1 %v6201_v12 }
 0x168   : > { %5460 = vmatmul.mubr.msk.f32.vlgmr.msra.gmra.mrb[2].mxu0 %vm601_vm0, %v6419_v36  ;;  %5471 = vmatmul.mubr.msk.f32.vlgmr.msra.gmra.mrb[2].mxu1 %vm601_vm0, %v6419_v36 }
 0x169   : > { %5899 = vmatpush3.bf16.msra.mxu0 %v5898_v46  ;;  %5905 = vmatpush3.bf16.msra.mxu1 %v5904_v47  ;;  %v5049_v46 = vld [vmem:[%s7298_s4 + $0x1] ss:$0 sm:$0xff] }
 0x16a   : > { %5900 = vmatprep.subr.bf16.mxu0 %v6201_v12  ;;  %5906 = vmatprep.subr.bf16.mxu1 %v6201_v12 }
 0x16b   : > { %5481 = vmatprep.mubr.msk.f32.mxu0 %vm6202_vm1, %v6203_v20  ;;  %5492 = vmatprep.mubr.msk.f32.mxu1 %vm6202_vm1, %v6203_v20 }
 0x16d   : > { %5902 = vmatpush3.bf16.msra.mxu0 %v5901_v52  ;;  %5908 = vmatpush3.bf16.msra.mxu1 %v5907_v53  ;;  %v5050_v53 = vld [vmem:[%s7298_s4 + $0x2] ss:$0 sm:$0xff] }
 0x16e   : > { %5909 = vmatprep.subr.bf16.mxu0 %v6201_v12  ;;  %5915 = vmatprep.subr.bf16.mxu1 %v6201_v12 }
 0x170   : > { %5482 = vmatmul.mubr.msk.f32.vlgmr.msra.gmra.mrb[4].mxu0 %vm601_vm0, %v6419_v36  ;;  %5493 = vmatmul.mubr.msk.f32.vlgmr.msra.gmra.mrb[4].mxu1 %vm601_vm0, %v6419_v36 }
 0x171   : > { %5911 = vmatpush3.bf16.msra.mxu0 %v5910_v58  ;;  %5917 = vmatpush3.bf16.msra.mxu1 %v5916_v59 }
 0x172   : > { %5912 = vmatprep.subr.bf16.mxu0 %v6201_v12  ;;  %5918 = vmatprep.subr.bf16.mxu1 %v6201_v12 }
 0x173   : > { %5503 = vmatprep.mubr.msk.f32.mxu0 %vm6202_vm1, %v6203_v20  ;;  %5514 = vmatprep.mubr.msk.f32.mxu1 %vm6202_vm1, %v6203_v20 }
 0x175   : > { %5914 = vmatpush3.bf16.msra.mxu0 %v5913_v1  ;;  %5920 = vmatpush3.bf16.msra.mxu1 %v5919_v2 }
 0x176   : > { %5921 = vmatprep.subr.bf16.mxu0 %v6201_v12  ;;  %5927 = vmatprep.subr.bf16.mxu1 %v6201_v12 }
 0x178   : > { %5504 = vmatmul.mubr.msk.f32.vlgmr.msra.gmra.mrb[6].mxu0 %vm601_vm0, %v6419_v36  ;;  %5515 = vmatmul.mubr.msk.f32.vlgmr.msra.gmra.mrb[6].mxu1 %vm601_vm0, %v6419_v36 }
 0x179   : > { %5923 = vmatpush3.bf16.msra.mxu0 %v5922_v7  ;;  %5929 = vmatpush3.bf16.msra.mxu1 %v5928_v8 }
 0x17a   : > { %5924 = vmatprep.subr.bf16.mxu0 %v6201_v12  ;;  %5930 = vmatprep.subr.bf16.mxu1 %v6201_v12 }
 0x17b   : > { %5525 = vmatprep.mubr.msk.f32.mxu0 %vm6202_vm1, %v6203_v20  ;;  %5536 = vmatprep.mubr.msk.f32.mxu1 %vm6202_vm1, %v6203_v20 }
 0x17d   : > { %5926 = vmatpush3.bf16.msra.mxu0 %v5925_v14  ;;  %5932 = vmatpush3.bf16.msra.mxu1 %v5931_v15 }
 0x17e   : > { %5933 = vmatprep.subr.bf16.mxu0 %v6201_v12  ;;  %5939 = vmatprep.subr.bf16.mxu1 %v6201_v12 }
 0x180   : > { %5526 = vmatmul.mubr.msk.f32.vlgmr.msra.gmra.mrb[8].mxu0 %vm601_vm0, %v6419_v36  ;;  %5537 = vmatmul.mubr.msk.f32.vlgmr.msra.gmra.mrb[8].mxu1 %vm601_vm0, %v6419_v36 }
 0x181   : > { %5935 = vmatpush3.bf16.msra.mxu0 %v5934_v21  ;;  %5941 = vmatpush3.bf16.msra.mxu1 %v5940_v22 }
 0x182   : > { %5936 = vmatprep.subr.bf16.mxu0 %v6201_v12  ;;  %5942 = vmatprep.subr.bf16.mxu1 %v6201_v12 }
 0x183   : > { %5547 = vmatprep.mubr.msk.f32.mxu0 %vm6202_vm1, %v6203_v20  ;;  %5558 = vmatprep.mubr.msk.f32.mxu1 %vm6202_vm1, %v6203_v20 }
 0x185   : > { %5938 = vmatpush3.bf16.msra.mxu0 %v5937_v27  ;;  %5944 = vmatpush3.bf16.msra.mxu1 %v5943_v28 }
 0x186   : > { %5561 = vmatprep.subr.mxu0 %v6203_v20  ;;  %5576 = vmatprep.subr.mxu1 %v6203_v20 }
 0x188   : > { %5548 = vmatmul.mubr.msk.f32.vlgmr.msra.gmra.mrb[10].mxu0 %vm601_vm0, %v6419_v36  ;;  %5559 = vmatmul.mubr.msk.f32.vlgmr.msra.gmra.mrb[10].mxu1 %vm601_vm0, %v6419_v36 }
 0x189   : > { %5563 = vmatprep.mubr.msk.f32.mxu0 %vm6202_vm1, %v6203_v20  ;;  %5578 = vmatprep.mubr.msk.f32.mxu1 %vm6202_vm1, %v6203_v20 }
 0x233   : > { %v743_v29 = vpop.f32.mrb[0].mxu0  ;;  %v813_v30 = vpop.f32.mrb[0].mxu1 }
 0x234   : > { %v5439_v31 = vpop.f32.mrb[1].mxu0  ;;  %v5450_v32 = vpop.f32.mrb[1].mxu1  ;;  %v744_v45 = vadd.f32 %v5048_v40, %v743_v29  ;;  %v814_v50 = vadd.f32 %v5049_v46, %v813_v30 }
 0x23b   : > { %v883_v33 = vpop.f32.mrb[2].mxu0  ;;  %v953_v34 = vpop.f32.mrb[2].mxu1 }
 0x23c   : > { %v5461_v35 = vpop.f32.mrb[3].mxu0  ;;  %v5472_v37 = vpop.f32.mrb[3].mxu1  ;;  %v884_v59 = vadd.f32 %v5050_v53, %v883_v33  ;;  %v954_v60 = vadd.f32 %v5051_v54, %v953_v34 }
 0x243   : > { %v1067_v39 = vpop.f32.mrb[4].mxu0  ;;  %v1137_v36 = vpop.f32.mrb[4].mxu1 }
 0x244   : > { %v1068_v41 = vadd.f32 %v5056_v38, %v1067_v39  ;;  %v5483_v42 = vpop.f32.mrb[5].mxu0  ;;  %v5494_v43 = vpop.f32.mrb[5].mxu1  ;;  %v1138_v47 = vadd.f32 %v5057_v44, %v1137_v36 }
 0x246   : > { %5562 = vmatpush3.xpose.msk.msra.mxu0 %vm1605_vm2, %v1068_v41 }
 0x247   : > { %5566 = vmatprep.subr.mxu0 %v6203_v20 }
 0x249   : > { %5564 = vmatmul.mubr.msk.f32.vlgmr.msra.gmra.mrb[12].mxu0 %vm1605_vm2, %v744_v45 }
 0x24a   : > { %5567 = vmatpush3.xpose.msk.msra.mxu0 %vm1605_vm2, %v1138_v47  ;;  %5568 = vmatprep.mubr.msk.f32.mxu0 %vm6202_vm1, %v6203_v20 }
 0x24b   : > { %v1207_v51 = vpop.f32.mrb[6].mxu0  ;;  %v1277_v52 = vpop.f32.mrb[6].mxu1  ;;  %5571 = vmatprep.subr.mxu0 %v6203_v20 }
 0x24c   : > { %v1208_v55 = vadd.f32 %v5058_v48, %v1207_v51  ;;  %v1278_v56 = vadd.f32 %v5059_v49, %v1277_v52  ;;  %v5505_v57 = vpop.f32.mrb[7].mxu0  ;;  %v5516_v58 = vpop.f32.mrb[7].mxu1  ;;  %v5066_v48 = vld [vmem:[%s7252_s8 + $0x2] ss:$0 sm:$0xff]  ;;  %v5067_v52 = vld [vmem:[%s7252_s8 + $0x3] ss:$0 sm:$0xff] }
 0x24d   : > { %5569 = vmatmul.mubr.msk.f32.vlgmr.msra.gmra.mrb[14].mxu0 %vm1605_vm2, %v814_v50 }
 0x24e   : > { %5572 = vmatpush3.xpose.msk.msra.mxu0 %vm1605_vm2, %v1208_v55  ;;  %5577 = vmatpush3.xpose.msk.msra.mxu1 %vm1605_vm2, %v1278_v56 }
 0x24f   : > { %5573 = vmatprep.mubr.msk.f32.mxu0 %vm6202_vm1, %v6203_v20  ;;  %5581 = vmatprep.subr.mxu0 %v6203_v20 }
 0x250   : > { %5586 = vmatprep.subr.mxu1 %v6203_v20 }
 0x251   : > { %5574 = vmatmul.mubr.msk.f32.vlgmr.msra.gmra.mrb[16].mxu0 %vm1605_vm2, %v884_v59  ;;  %5579 = vmatmul.mubr.msk.f32.vlgmr.msra.gmra.mrb[12].mxu1 %vm1605_vm2, %v954_v60  ;;  %v2246_v60 = vld [vmem:[%s7253_s9] sm:$0xff] }
 0x252   : > { %5583 = vmatprep.mubr.msk.f32.mxu0 %vm6202_vm1, %v6203_v20  ;;  %5588 = vmatprep.mubr.msk.f32.mxu1 %vm6202_vm1, %v6203_v20 }
 0x253   : > { %v1391_v63 = vpop.f32.mrb[8].mxu0  ;;  %v1461_v1 = vpop.f32.mrb[8].mxu1 }
 0x254   : > { %v1392_v2 = vadd.f32 %v5064_v61, %v1391_v63  ;;  %v1462_v3 = vadd.f32 %v5065_v62, %v1461_v1  ;;  %v5527_v4 = vpop.f32.mrb[9].mxu0  ;;  %v5538_v5 = vpop.f32.mrb[9].mxu1  ;;  %v2247_v61 = vld [vmem:[%s7253_s9 + $0x8] sm:$0xff]  ;;  %v2248_v62 = vld [vmem:[%s7253_s9 + $0x10] sm:$0xff] }
 0x256   : > { %5582 = vmatpush3.msra.mxu0 %v1392_v2  ;;  %5587 = vmatpush3.msra.mxu1 %v1462_v3  ;;  %v2249_v2 = vld [vmem:[%s7253_s9 + $0x18] sm:$0xff] }
 0x257   : > { %5591 = vmatprep.subr.mxu0 %v6203_v20  ;;  %5596 = vmatprep.subr.mxu1 %v6203_v20 }
 0x25b   : > { %v1531_v6 = vpop.f32.mrb[10].mxu0  ;;  %v6646_v7 = vpop.f32.mrb[10].mxu1 }
 0x25c   : > { %v5549_v8 = vpop.f32.mrb[11].mxu0  ;;  %v5560_v9 = vpop.f32.mrb[11].mxu1  ;;  %v1532_v51 = vadd.f32 %v5066_v48, %v1531_v6  ;;  %v1602_v55 = vadd.f32 %v5067_v52, %v6646_v7 }
 0x31c   : > { %v1678_v10 = vpop.f32.mrb[12].mxu0 }
 0x31d   : > { %v5565_v11 = vpop.f32.mrb[13].mxu0  ;;  %v1910_v13 = vsel %vm1605_vm2, %v1678_v10, -inf }
 0x31e   : > { %1911 = vmax.xlane.f32.xlu1 %v1910_v13 }
 0x320   : > { %v1754_v14 = vpop.f32.mrb[14].mxu0 }
 0x321   : > { %v5570_v15 = vpop.f32.mrb[15].mxu0  ;;  %v1913_v16 = vsel %vm1605_vm2, %v1754_v14, -inf }
 0x322   : > { %1914 = vmax.xlane.f32.xlu1 %v1913_v16 }
 0x324   : > { %v1830_v17 = vpop.f32.mrb[16].mxu0  ;;  %v1906_v18 = vpop.f32.mrb[12].mxu1 }
 0x325   : > { %v5575_v19 = vpop.f32.mrb[17].mxu0  ;;  %v5580_v21 = vpop.f32.mrb[13].mxu1  ;;  %v1919_v22 = vsel %vm1605_vm2, %v1906_v18, -inf  ;;  %v1916_v23 = vsel %vm1605_vm2, %v1830_v17, -inf }
 0x326   : > { %1920 = vmax.xlane.f32.xlu1 %v1919_v22  ;;  %1917 = vmax.xlane.f32.xlu0 %v1916_v23 }
 0x3ab   : > { %v1912_v24 = vpop.xlane.xlu1 %1911 }
 0x3ac   : > { %v1922_v25 = vsub.f32 %v1678_v10, %v1912_v24 }
 0x3ae   : > { %v1926_v26 = vmul.f32 1.442695, %v1922_v25  ;;  %v5088_v25 = vld [vmem:[%s7254_s10] ss:$0 sm:$0xff] }
 0x3af   : > { %v1915_v27 = vpop.xlane.xlu1 %1914 }
 0x3b0   : > { %6097 = vpow2.f32 %v1926_v26  ;;  %v1923_v28 = vsub.f32 %v1754_v14, %v1915_v27 }
 0x3b2   : > { %v1928_v29 = vmul.f32 1.442695, %v1923_v28 }
 0x3b3   : > { %v1921_v30 = vpop.xlane.xlu1 %1920  ;;  %v1918_v31 = vpop.xlane.xlu0 %1917 }
 0x3b4   : > { %6099 = vpow2.f32 %v1928_v29  ;;  %v1925_v32 = vsub.f32 %v1906_v18, %v1921_v30  ;;  %v1924_v33 = vsub.f32 %v1830_v17, %v1918_v31 }
 0x3b6   : > { %v1932_v34 = vmul.f32 1.442695, %v1925_v32  ;;  %v1930_v35 = vmul.f32 1.442695, %v1924_v33 }
 0x3b8   : > { %6101 = vpow2.f32 %v1932_v34 }
 0x3b9   : > { %6103 = vpow2.f32 %v1930_v35  ;;  %v2587_v35 = vld [vmem:[%s7257_s13] sm:$0xff] }
 0x3ba   : > { %v6098_v37 = vpop.eup %6097 }
 0x3bb   : > { %v1934_v38 = vsel %vm1605_vm2, %v6098_v37, 0.0 }
 0x3bc   : > { %1935 = vadd.xlane.f32.xlu0 %v1934_v38  ;;  %v2589_v38 = vld [vmem:[%s7257_s13 + $0x10] sm:$0xff] }
 0x3be   : > { %v6100_v39 = vpop.eup %6099 }
 0x3bf   : > { %v1937_v36 = vsel %vm1605_vm2, %v6100_v39, 0.0 }
 0x3c0   : > { %1938 = vadd.xlane.f32.xlu1 %v1937_v36 }
 0x3c2   : > { %v6102_v40 = vpop.eup %6101 }
 0x3c3   : > { %v6104_v41 = vpop.eup %6103  ;;  %v1943_v42 = vsel %vm1605_vm2, %v6102_v40, 0.0 }
 0x3c4   : > { %1944 = vadd.xlane.f32.xlu1 %v1943_v42  ;;  %v1940_v43 = vsel %vm1605_vm2, %v6104_v41, 0.0  ;;  %v2674_v42 = vld [vmem:[%s7259_s15 + $0x10] sm:$0xff] }
 0x3c5   : > { %1941 = vadd.xlane.f32.xlu0 %v1940_v43 }
 0x449   : > { %v1936_v44 = vpop.xlane.xlu0 %1935 }
 0x44a   : > { %6105 = vrcp.f32 %v1936_v44  ;;  %v2675_v44 = vld [vmem:[%s7259_s15 + $0x18] sm:$0xff] }
 0x44d   : > { %v1939_v45 = vpop.xlane.xlu1 %1938 }
 0x44e   : > { %6107 = vrcp.f32 %v1939_v45  ;;  %v5955_v45 = vpack.c.bf16 %v2675_v44, %v2674_v42  ;;  %v5129_v44 = vld [vmem:[%s7297_s5 + $0x90] sm:$0xff] }
 0x451   : > { %v1945_v46 = vpop.xlane.xlu1 %1944 }
 0x452   : > { %6109 = vrcp.f32 %v1945_v46  ;;  %v1942_v47 = vpop.xlane.xlu0 %1941  ;;  %v2676_v46 = vld [vmem:[%s7259_s15 + $0x20] sm:$0xff] }
 0x453   : > { %6111 = vrcp.f32 %v1942_v47  ;;  %v2677_v47 = vld [vmem:[%s7259_s15 + $0x28] sm:$0xff] }
 0x454   : > { %v6106_v49 = vpop.eup %6105  ;;  %v5958_v48 = vpack.c.bf16 %v2677_v47, %v2676_v46 }
 0x455   : > { %v1950_v50 = vmul.f32 %v6106_v49, %v6098_v37 }
 0x457   : > { %5584 = vmatmul.mubr.msk.f32.vlgmr.msra.gmra.mrb[18].mxu0 %vm1605_vm2, %v1950_v50 }
 0x458   : > { %v6108_v53 = vpop.eup %6107  ;;  %5592 = vmatpush3.msra.mxu0 %v1532_v51  ;;  %5593 = vmatprep.mubr.msk.f32.mxu0 %vm6202_vm1, %v6203_v20 }
 0x459   : > { %v1951_v54 = vmul.f32 %v6108_v53, %v6100_v39  ;;  %5601 = vmatprep.subr.mxu0 %v6203_v20  ;;  %v2590_v39 = vld [vmem:[%s7257_s13 + $0x18] sm:$0xff]  ;;  %v5089_v53 = vld [vmem:[%s7255_s11] ss:$0 sm:$0xff] }
 0x45a   : > { %v5949_v36 = vpack.c.bf16 %v2590_v39, %v2589_v38  ;;  %v5098_v38 = vld [vmem:[%s7296_s18 + $0x1] ss:$0 sm:$0xff] }
 0x45b   : > { %5589 = vmatmul.mubr.msk.f32.vlgmr.msra.gmra.mrb[14].mxu1 %vm1605_vm2, %v1951_v54 }
 0x45c   : > { %v6110_v56 = vpop.eup %6109  ;;  %5597 = vmatpush3.msra.mxu1 %v1602_v55  ;;  %5598 = vmatprep.mubr.msk.f32.mxu1 %vm6202_vm1, %v6203_v20  ;;  %v5090_v55 = vld [vmem:[%s7256_s12] ss:$0 sm:$0xff] }
 0x45d   : > { %v6112_v57 = vpop.eup %6111  ;;  %v1953_v58 = vmul.f32 %v6110_v56, %v6102_v40  ;;  %5606 = vmatprep.subr.mxu1 %v6203_v20  ;;  %v2672_v40 = vld [vmem:[%s7259_s15] sm:$0xff] }
 0x45e   : > { %v1952_v59 = vmul.f32 %v6112_v57, %v6104_v41  ;;  %v2673_v41 = vld [vmem:[%s7259_s15 + $0x8] sm:$0xff] }
 0x45f   : > { %5599 = vmatmul.mubr.msk.f32.vlgmr.msra.gmra.mrb[16].mxu1 %vm1605_vm2, %v1953_v58  ;;  %v5952_v43 = vpack.c.bf16 %v2673_v41, %v2672_v40  ;;  %v2678_v58 = vld [vmem:[%s7259_s15 + $0x30] sm:$0xff] }
 0x460   : > { %5594 = vmatmul.mubr.msk.f32.vlgmr.msra.gmra.mrb[20].mxu0 %vm1605_vm2, %v1952_v59  ;;  %5608 = vmatprep.mubr.msk.f32.mxu1 %vm6202_vm1, %v6203_v20  ;;  %v2679_v59 = vld [vmem:[%s7259_s15 + $0x38] sm:$0xff]  ;;  %v5105_v41 = vld [vmem:[%s7293_s2 + $0xb0] sm:$0xff] }
 0x461   : > { %5603 = vmatprep.mubr.msk.f32.mxu0 %vm6202_vm1, %v6203_v20  ;;  %5602 = vmatpush3.msra.mxu0 %v2246_v60  ;;  %v5961_v60 = vpack.c.bf16 %v2679_v59, %v2678_v58 }
 0x462   : > { %5611 = vmatprep.subr.mxu0 %v6203_v20  ;;  %5607 = vmatpush3.msra.mxu1 %v2247_v61  ;;  %v5091_v61 = vld [vmem:[%s7258_s14] ss:$0 sm:$0xff] }
 0x463   : > { %5616 = vmatprep.subr.mxu1 %v6203_v20 }
 0x52a   : > { %v2023_v63 = vpop.f32.mrb[18].mxu0 }
 0x52b   : > { %v5585_v1 = vpop.f32.mrb[19].mxu0  ;;  %5604 = vmatmul.mubr.msk.f32.vlgmr.msra.gmra.mrb[22].mxu0 %vm1605_vm2, %v2023_v63 }
 0x52c   : > { %5612 = vmatpush3.msra.mxu0 %v2248_v62  ;;  %5613 = vmatprep.mubr.msk.f32.mxu0 %vm6202_vm1, %v6203_v20 }
 0x52d   : > { %5945 = vmatprep.subr.bf16.mxu0 %v6201_v12 }
 0x52e   : > { %v2096_v3 = vpop.f32.mrb[14].mxu1 }
 0x52f   : > { %v5590_v4 = vpop.f32.mrb[15].mxu1  ;;  %5609 = vmatmul.mubr.msk.f32.vlgmr.msra.gmra.mrb[18].mxu1 %vm1605_vm2, %v2096_v3  ;;  %v5093_v3 = vld [vmem:[%s7260_s16] ss:$0 sm:$0xff] }
 0x530   : > { %5617 = vmatpush3.msra.mxu1 %v2249_v2  ;;  %5618 = vmatprep.mubr.msk.f32.mxu1 %vm6202_vm1, %v6203_v20 }
 0x531   : > { %5951 = vmatprep.subr.bf16.mxu1 %v6201_v12 }
 0x532   : > { %v2242_v5 = vpop.f32.mrb[16].mxu1 }
 0x533   : > { %v2169_v6 = vpop.f32.mrb[20].mxu0  ;;  %v5600_v7 = vpop.f32.mrb[17].mxu1  ;;  %5619 = vmatmul.mubr.msk.f32.vlgmr.msra.gmra.mrb[20].mxu1 %vm1605_vm2, %v2242_v5 }
 0x534   : > { %v5595_v8 = vpop.f32.mrb[21].mxu0  ;;  %5614 = vmatmul.mubr.msk.f32.vlgmr.msra.gmra.mrb[24].mxu0 %vm1605_vm2, %v2169_v6  ;;  %5648 = vmatprep.mubr.msk.f32.mxu1 %vm6202_vm1, %v6203_v20 }
 0x535   : > { %5629 = vmatprep.mubr.msk.f32.mxu0 %vm6202_vm1, %v6203_v20  ;;  %5953 = vmatpush3.bf16.msra.mxu1 %v5952_v43  ;;  %v5106_v43 = vld [vmem:[%s7293_s2 + $0xb8] sm:$0xff] }
 0x536   : > { %5954 = vmatprep.subr.bf16.mxu1 %v6201_v12  ;;  %v5973_v46 = vpack.c.bf16 %v5106_v43, %v5105_v41  ;;  %v5119_v43 = vld [vmem:[%s7298_s4 + $0x4] ss:$0 sm:$0xff] }
 0x539   : > { %5956 = vmatpush3.bf16.msra.mxu1 %v5955_v45  ;;  %v5130_v45 = vld [vmem:[%s7297_s5 + $0x98] sm:$0xff] }
 0x53a   : > { %5957 = vmatprep.subr.bf16.mxu1 %v6201_v12  ;;  %v5991_v47 = vpack.c.bf16 %v5130_v45, %v5129_v44 }
 0x53d   : > { %5959 = vmatpush3.bf16.msra.mxu1 %v5958_v48  ;;  %v5111_v48 = vld [vmem:[%s7293_s2 + $0xe0] sm:$0xff] }
 0x53e   : > { %5960 = vmatprep.subr.bf16.mxu1 %v6201_v12 }
 0x541   : > { %5962 = vmatpush3.bf16.msra.mxu1 %v5961_v60  ;;  %v5131_v60 = vld [vmem:[%s7297_s5 + $0xa0] sm:$0xff] }
 0x542   : > { %5975 = vmatprep.subr.bf16.mxu1 %v6201_v12 }
 0x5fe   : > { %v2319_v9 = vpop.f32.mrb[22].mxu0 }
 0x5ff   : > { %v5605_v10 = vpop.f32.mrb[23].mxu0  ;;  %v2542_v13 = vsel %vm601_vm0, %v2319_v9, 0.0 }
 0x602   : > { %v2392_v11 = vpop.f32.mrb[18].mxu1 }
 0x603   : > { %v2543_v14 = vsel %vm601_vm0, %v2392_v11, 0.0  ;;  %v5610_v15 = vpop.f32.mrb[19].mxu1 }
 0x604   : > { %v2544_v16 = vadd.f32 %v2543_v14, %v2542_v13  ;;  %v5099_v15 = vld [vmem:[%s7293_s2 + $0x80] sm:$0xff] }
 0x606   : > { %v2538_v17 = vpop.f32.mrb[20].mxu1 }
 0x607   : > { %v2465_v18 = vpop.f32.mrb[24].mxu0  ;;  %v5620_v19 = vpop.f32.mrb[21].mxu1  ;;  %v2547_v24 = vsel %vm601_vm0, %v2538_v17, 0.0  ;;  %v5107_v17 = vld [vmem:[%s7293_s2 + $0xc0] sm:$0xff] }
 0x608   : > { %v2545_v21 = vsel %vm601_vm0, %v2465_v18, 0.0  ;;  %v5615_v22 = vpop.f32.mrb[25].mxu0  ;;  %v5108_v19 = vld [vmem:[%s7293_s2 + $0xc8] sm:$0xff] }
 0x609   : > { %v2546_v23 = vadd.f32 %v2545_v21, %v2544_v16  ;;  %v5100_v16 = vld [vmem:[%s7293_s2 + $0x88] sm:$0xff]  ;;  %v5976_v21 = vpack.c.bf16 %v5108_v19, %v5107_v17  ;;  %v5101_v22 = vld [vmem:[%s7293_s2 + $0x90] sm:$0xff] }
 0x60a   : > { %v5964_v18 = vpack.c.bf16 %v5100_v16, %v5099_v15  ;;  %v5141_v17 = vld [vmem:[%s7297_s5 + $0xf0] sm:$0xff] }
 0x60b   : > { %v2548_v26 = vadd.f32 %v2547_v24, %v2546_v23  ;;  %v5102_v23 = vld [vmem:[%s7293_s2 + $0x98] sm:$0xff]  ;;  %v5109_v24 = vld [vmem:[%s7293_s2 + $0xd0] sm:$0xff] }
 0x60c   : > { %v5165_v19 = vld [vmem:[%s7251_s7 + $0xd0] sm:$0xff] }
 0x60d   : > { %v2556_v27 = vadd.f32 %v5088_v25, %v2548_v26  ;;  %v5967_v25 = vpack.c.bf16 %v5102_v23, %v5101_v22  ;;  %v5110_v26 = vld [vmem:[%s7293_s2 + $0xd8] sm:$0xff] }
 0x60f   : > { %v6713_v28 = vadd.f32 %v2556_v27, %v6358_v0  ;;  %v2588_v0 = vld [vmem:[%s7257_s13 + $0x8] sm:$0xff]  ;;  %v5979_v27 = vpack.c.bf16 %v5110_v26, %v5109_v24  ;;  %v5159_v24 = vld [vmem:[%s7251_s7 + $0xa0] sm:$0xff] }
 0x610   : > { %v5946_v37 = vpack.c.bf16 %v2588_v0, %v2587_v35  ;;  %v5104_v35 = vld [vmem:[%s7293_s2 + $0xa8] sm:$0xff]  ;;  %v5127_v0 = vld [vmem:[%s7297_s5 + $0x80] sm:$0xff] }
 0x611   : > { %v2560_v29 = vsel %vm601_vm0, %v6713_v28, 0.0 }
 0x612   : > { %2561 = vadd.xlane.f32.xlu0 %v2560_v29  ;;  %5947 = vmatpush3.bf16.msra.mxu0 %v5946_v37  ;;  %v5128_v37 = vld [vmem:[%s7297_s5 + $0x88] sm:$0xff] }
 0x613   : > { %5948 = vmatprep.subr.bf16.mxu0 %v6201_v12  ;;  %v5988_v40 = vpack.c.bf16 %v5128_v37, %v5127_v0 }
 0x616   : > { %5950 = vmatpush3.bf16.msra.mxu0 %v5949_v36 }
 0x617   : > { %5963 = vmatprep.subr.bf16.mxu0 %v6201_v12 }
 0x69f   : > { %v2562_v30 = vpop.xlane.xlu0 %2561 }
 0x6a0   : > { %v2563_v31 = vmul.f32 0.03125, %v2562_v30 }
 0x6a2   : > { %v2564_v32 = vsub.f32 %v6713_v28, %v2563_v31 }
 0x6a4   : > { %v2565_v33 = vmul.f32 %v2564_v32, %v2564_v32 }
 0x6a6   : > { %v2566_v34 = vsel %vm601_vm0, %v2565_v33, 0.0  ;;  %v5103_v33 = vld [vmem:[%s7293_s2 + $0xa0] sm:$0xff] }
 0x6a7   : > { %2567 = vadd.xlane.f32.xlu1 %v2566_v34  ;;  %v5970_v36 = vpack.c.bf16 %v5104_v35, %v5103_v33  ;;  %v5169_v33 = vld [vmem:[%s7251_s7 + $0xf0] sm:$0xff] }
 0x734   : > { %v2568_v49 = vpop.xlane.xlu1 %2567 }
 0x735   : > { %v2569_v50 = vmul.f32 0.03125, %v2568_v49  ;;  %v5112_v49 = vld [vmem:[%s7293_s2 + $0xe8] sm:$0xff] }
 0x737   : > { %v2570_v51 = vadd.f32 1e-06, %v2569_v50  ;;  %v5135_v50 = vld [vmem:[%s7297_s5 + $0xc0] sm:$0xff] }
 0x739   : > { %6113 = vrsqrt.f32 %v2570_v51  ;;  %v5136_v51 = vld [vmem:[%s7297_s5 + $0xc8] sm:$0xff] }
 0x743   : > { %v6114_v52 = vpop.eup %6113 }
 0x744   : > { %v2572_v54 = vmul.f32 %v6114_v52, %v2564_v32  ;;  %v5097_v32 = vld [vmem:[%s7294_s25 + $0x1] ss:$0 sm:$0xff]  ;;  %v5982_v52 = vpack.c.bf16 %v5112_v49, %v5111_v48 }
 0x746   : > { %v2579_v56 = vmul.f32 %v5089_v53, %v2572_v54  ;;  %v6000_v53 = vpack.c.bf16 %v5136_v51, %v5135_v50  ;;  %v5113_v54 = vld [vmem:[%s7293_s2 + $0xf0] sm:$0xff]  ;;  %v5121_v50 = vld [vmem:[%s7298_s4 + $0x6] ss:$0 sm:$0xff] }
 0x748   : > { %v2586_v57 = vadd.f32 %v5090_v55, %v2579_v56  ;;  %v5114_v55 = vld [vmem:[%s7293_s2 + $0xf8] sm:$0xff]  ;;  %v5137_v56 = vld [vmem:[%s7297_s5 + $0xd0] sm:$0xff] }
 0x749   : > { %v5985_v58 = vpack.c.bf16 %v5114_v55, %v5113_v54  ;;  %v5148_v55 = vld [vmem:[%s7250_s6 + $0x5] ss:$0 sm:$0xff] }
 0x74a   : > { %5630 = vmatmul.mubr.msk.f32.vlgmr.msra.gmra.mrb[26].mxu0 %vm601_vm0, %v2586_v57  ;;  %v5138_v57 = vld [vmem:[%s7297_s5 + $0xd8] sm:$0xff] }
 0x74b   : > { %5659 = vmatprep.mubr.msk.f32.mxu0 %vm6202_vm1, %v6203_v20  ;;  %5965 = vmatpush3.bf16.msra.mxu0 %v5964_v18  ;;  %v6003_v59 = vpack.c.bf16 %v5138_v57, %v5137_v56  ;;  %v5142_v18 = vld [vmem:[%s7297_s5 + $0xf8] sm:$0xff]  ;;  %v5175_v56 = vld [vmem:[%s7252_s8 + $0x4] ss:$0 sm:$0xff] }
 0x74c   : > { %5966 = vmatprep.subr.bf16.mxu0 %v6201_v12  ;;  %v6009_v22 = vpack.c.bf16 %v5142_v18, %v5141_v17 }
 0x74f   : > { %5968 = vmatpush3.bf16.msra.mxu0 %v5967_v25  ;;  %v5160_v25 = vld [vmem:[%s7251_s7 + $0xa8] sm:$0xff] }
 0x750   : > { %5969 = vmatprep.subr.bf16.mxu0 %v6201_v12  ;;  %v6018_v26 = vpack.c.bf16 %v5160_v25, %v5159_v24 }
 0x81d   : > { %v2667_v62 = vpop.f32.mrb[26].mxu0 }
 0x81e   : > { %v2668_v63 = vadd.f32 %v5091_v61, %v2667_v62  ;;  %v5631_v1 = vpop.f32.mrb[27].mxu0  ;;  %v5132_v61 = vld [vmem:[%s7297_s5 + $0xa8] sm:$0xff]  ;;  %v5155_v62 = vld [vmem:[%s7251_s7 + $0x80] sm:$0xff] }
 0x81f   : > { %v5994_v1 = vpack.c.bf16 %v5132_v61, %v5131_v60 }
 0x820   : > { %v2671_v2 = vmax.f32 %v2668_v63, 0.0  ;;  %v5156_v63 = vld [vmem:[%s7251_s7 + $0x88] sm:$0xff] }
 0x822   : > { %5649 = vmatmul.mubr.msk.f32.vlgmr.msra.gmra.mrb[22].mxu1 %vm2687_vm3, %v2671_v2  ;;  %v6012_v2 = vpack.c.bf16 %v5156_v63, %v5155_v62 }
 0x823   : > { %5681 = vmatprep.mubr.msk.f32.mxu1 %vm6202_vm1, %v6203_v20  ;;  %5977 = vmatpush3.bf16.msra.mxu1 %v5976_v21  ;;  %v5166_v21 = vld [vmem:[%s7251_s7 + $0xd8] sm:$0xff] }
 0x824   : > { %5978 = vmatprep.subr.bf16.mxu1 %v6201_v12  ;;  %v6027_v23 = vpack.c.bf16 %v5166_v21, %v5165_v19 }
 0x827   : > { %5980 = vmatpush3.bf16.msra.mxu1 %v5979_v27  ;;  %v5161_v27 = vld [vmem:[%s7251_s7 + $0xb0] sm:$0xff] }
 0x828   : > { %5987 = vmatprep.subr.bf16.mxu1 %v6201_v12 }
 0x8f5   : > { %v2757_v4 = vpop.f32.mrb[22].mxu1 }
 0x8f6   : > { %v2758_v5 = vadd.f32 %v5093_v3, %v2757_v4  ;;  %v5650_v6 = vpop.f32.mrb[23].mxu1  ;;  %v5133_v3 = vld [vmem:[%s7297_s5 + $0xb0] sm:$0xff]  ;;  %v5134_v4 = vld [vmem:[%s7297_s5 + $0xb8] sm:$0xff] }
 0x8f7   : > { %v5158_v6 = vld [vmem:[%s7251_s7 + $0x98] sm:$0xff] }
 0x8f8   : > { %v6780_v7 = vadd.f32 %v2758_v5, %v6713_v28  ;;  %v5157_v5 = vld [vmem:[%s7251_s7 + $0x90] sm:$0xff] }
 0x8fa   : > { %v2766_v8 = vsel %vm601_vm0, %v6780_v7, 0.0 }
 0x8fb   : > { %2767 = vadd.xlane.f32.xlu0 %v2766_v8  ;;  %v5997_v8 = vpack.c.bf16 %v5134_v4, %v5133_v3 }
 0x988   : > { %v2768_v9 = vpop.xlane.xlu0 %2767 }
 0x989   : > { %v2769_v10 = vmul.f32 0.03125, %v2768_v9  ;;  %v6015_v9 = vpack.c.bf16 %v5158_v6, %v5157_v5  ;;  %v5122_v5 = vld [vmem:[%s7298_s4 + $0x7] ss:$0 sm:$0xff] }
 0x98b   : > { %v2770_v11 = vsub.f32 %v6780_v7, %v2769_v10  ;;  %v5139_v10 = vld [vmem:[%s7297_s5 + $0xe0] sm:$0xff] }
 0x98d   : > { %v2771_v13 = vmul.f32 %v2770_v11, %v2770_v11 }
 0x98f   : > { %v2772_v14 = vsel %vm601_vm0, %v2771_v13, 0.0  ;;  %v5163_v13 = vld [vmem:[%s7251_s7 + $0xc0] sm:$0xff] }
 0x990   : > { %2773 = vadd.xlane.f32.xlu1 %v2772_v14  ;;  %v5164_v14 = vld [vmem:[%s7251_s7 + $0xc8] sm:$0xff] }
 0x991   : > { %v6024_v16 = vpack.c.bf16 %v5164_v14, %v5163_v13 }
 0xa1d   : > { %v2774_v28 = vpop.xlane.xlu1 %2773 }
 0xa1e   : > { %v2775_v29 = vmul.f32 0.03125, %v2774_v28  ;;  %v5162_v28 = vld [vmem:[%s7251_s7 + $0xb8] sm:$0xff] }
 0xa20   : > { %v2776_v30 = vadd.f32 1e-06, %v2775_v29  ;;  %v6021_v29 = vpack.c.bf16 %v5162_v28, %v5161_v27 }
 0xa22   : > { %6115 = vrsqrt.f32 %v2776_v30  ;;  %v5167_v30 = vld [vmem:[%s7251_s7 + $0xe0] sm:$0xff] }
 0xa2c   : > { %v6116_v31 = vpop.eup %6115 }
 0xa2d   : > { %v2778_v34 = vmul.f32 %v6116_v31, %v2770_v11  ;;  %v5140_v11 = vld [vmem:[%s7297_s5 + $0xe8] sm:$0xff] }
 0xa2e   : > { %v6006_v15 = vpack.c.bf16 %v5140_v11, %v5139_v10  ;;  %v5168_v31 = vld [vmem:[%s7251_s7 + $0xe8] sm:$0xff]  ;;  %v5176_v11 = vld [vmem:[%s7252_s8 + $0x5] ss:$0 sm:$0xff] }
 0xa2f   : > { %v2785_v39 = vmul.f32 %v5097_v32, %v2778_v34  ;;  %v6030_v32 = vpack.c.bf16 %v5168_v31, %v5167_v30  ;;  %v5170_v34 = vld [vmem:[%s7251_s7 + $0xf8] sm:$0xff] }
 0xa30   : > { %v6033_v35 = vpack.c.bf16 %v5170_v34, %v5169_v33 }
 0xa31   : > { %v6835_v42 = vadd.f32 %v5098_v38, %v2785_v39 }
 0xa33   : > { %5660 = vmatmul.mubr.msk.f32.vlgmr.msra.gmra.mrb[28].mxu0 %vm601_vm0, %v6835_v42  ;;  %5682 = vmatmul.mubr.msk.f32.vlgmr.msra.gmra.mrb[24].mxu1 %vm601_vm0, %v6835_v42 }
 0xa34   : > { %5971 = vmatpush3.bf16.msra.mxu0 %v5970_v36  ;;  %5989 = vmatpush3.bf16.msra.mxu1 %v5988_v40  ;;  %v5147_v36 = vld [vmem:[%s7250_s6 + $0x4] ss:$0 sm:$0xff] }
 0xa35   : > { %5972 = vmatprep.subr.bf16.mxu0 %v6201_v12  ;;  %5990 = vmatprep.subr.bf16.mxu1 %v6201_v12 }
 0xa36   : > { %5670 = vmatprep.mubr.msk.f32.mxu0 %vm6202_vm1, %v6203_v20  ;;  %5703 = vmatprep.mubr.msk.f32.mxu1 %vm6202_vm1, %v6203_v20 }
 0xa38   : > { %5974 = vmatpush3.bf16.msra.mxu0 %v5973_v46  ;;  %5992 = vmatpush3.bf16.msra.mxu1 %v5991_v47  ;;  %v5149_v47 = vld [vmem:[%s7250_s6 + $0x6] ss:$0 sm:$0xff] }
 0xa39   : > { %5981 = vmatprep.subr.bf16.mxu0 %v6201_v12  ;;  %5999 = vmatprep.subr.bf16.mxu1 %v6201_v12 }
 0xa3b   : > { %5671 = vmatmul.mubr.msk.f32.vlgmr.msra.gmra.mrb[30].mxu0 %vm601_vm0, %v6835_v42  ;;  %5704 = vmatmul.mubr.msk.f32.vlgmr.msra.gmra.mrb[26].mxu1 %vm601_vm0, %v6835_v42 }
 0xa3c   : > { %5983 = vmatpush3.bf16.msra.mxu0 %v5982_v52  ;;  %6001 = vmatpush3.bf16.msra.mxu1 %v6000_v53 }
 0xa3d   : > { %5984 = vmatprep.subr.bf16.mxu0 %v6201_v12  ;;  %6002 = vmatprep.subr.bf16.mxu1 %v6201_v12 }
 0xa3e   : > { %5692 = vmatprep.mubr.msk.f32.mxu0 %vm6202_vm1, %v6203_v20  ;;  %5725 = vmatprep.mubr.msk.f32.mxu1 %vm6202_vm1, %v6203_v20 }
 0xa40   : > { %5986 = vmatpush3.bf16.msra.mxu0 %v5985_v58  ;;  %6004 = vmatpush3.bf16.msra.mxu1 %v6003_v59  ;;  %v5120_v59 = vld [vmem:[%s7298_s4 + $0x5] ss:$0 sm:$0xff]  ;;  %s7300_s4 = sld [smem:[#allocation18_spill]] }
 0xa41   : > { %5993 = vmatprep.subr.bf16.mxu0 %v6201_v12  ;;  %6011 = vmatprep.subr.bf16.mxu1 %v6201_v12 }
 0xa43   : > { %5693 = vmatmul.mubr.msk.f32.vlgmr.msra.gmra.mrb[32].mxu0 %vm601_vm0, %v6835_v42  ;;  %5726 = vmatmul.mubr.msk.f32.vlgmr.msra.gmra.mrb[28].mxu1 %vm601_vm0, %v6835_v42 }
 0xa44   : > { %5995 = vmatpush3.bf16.msra.mxu0 %v5994_v1  ;;  %6013 = vmatpush3.bf16.msra.mxu1 %v6012_v2  ;;  %v5150_v2 = vld [vmem:[%s7250_s6 + $0x7] ss:$0 sm:$0xff] }
 0xa45   : > { %5996 = vmatprep.subr.bf16.mxu0 %v6201_v12  ;;  %6014 = vmatprep.subr.bf16.mxu1 %v6201_v12 }
 0xa46   : > { %5714 = vmatprep.mubr.msk.f32.mxu0 %vm6202_vm1, %v6203_v20  ;;  %5747 = vmatprep.mubr.msk.f32.mxu1 %vm6202_vm1, %v6203_v20  ;;  %s7201_s5 = scalar_lea.hbm %s7300_s4, %s5230_s28 }
 0xa48   : > { %5998 = vmatpush3.bf16.msra.mxu0 %v5997_v8  ;;  %6016 = vmatpush3.bf16.msra.mxu1 %v6015_v9 }
 0xa49   : > { %6005 = vmatprep.subr.bf16.mxu0 %v6201_v12  ;;  %6023 = vmatprep.subr.bf16.mxu1 %v6201_v12 }
 0xa4b   : > { %5715 = vmatmul.mubr.msk.f32.vlgmr.msra.gmra.mrb[34].mxu0 %vm601_vm0, %v6835_v42  ;;  %5748 = vmatmul.mubr.msk.f32.vlgmr.msra.gmra.mrb[30].mxu1 %vm601_vm0, %v6835_v42 }
 0xa4c   : > { %6007 = vmatpush3.bf16.msra.mxu0 %v6006_v15  ;;  %6025 = vmatpush3.bf16.msra.mxu1 %v6024_v16 }
 0xa4d   : > { %6008 = vmatprep.subr.bf16.mxu0 %v6201_v12  ;;  %6026 = vmatprep.subr.bf16.mxu1 %v6201_v12 }
 0xa4e   : > { %5736 = vmatprep.mubr.msk.f32.mxu0 %vm6202_vm1, %v6203_v20  ;;  %5769 = vmatprep.mubr.msk.f32.mxu1 %vm6202_vm1, %v6203_v20 }
 0xa50   : > { %6010 = vmatpush3.bf16.msra.mxu0 %v6009_v22  ;;  %6028 = vmatpush3.bf16.msra.mxu1 %v6027_v23 }
 0xa51   : > { %6017 = vmatprep.subr.bf16.mxu0 %v6201_v12  ;;  %5783 = vmatprep.subr.mxu1 %v6203_v20 }
 0xa53   : > { %5737 = vmatmul.mubr.msk.f32.vlgmr.msra.gmra.mrb[36].mxu0 %vm601_vm0, %v6835_v42  ;;  %5770 = vmatmul.mubr.msk.f32.vlgmr.msra.gmra.mrb[32].mxu1 %vm601_vm0, %v6835_v42 }
 0xa54   : > { %6019 = vmatpush3.bf16.msra.mxu0 %v6018_v26  ;;  %5758 = vmatprep.mubr.msk.f32.mxu0 %vm6202_vm1, %v6203_v20 }
 0xa55   : > { %6020 = vmatprep.subr.bf16.mxu0 %v6201_v12  ;;  %5785 = vmatprep.mubr.msk.f32.mxu1 %vm6202_vm1, %v6203_v20 }
 0xa58   : > { %6022 = vmatpush3.bf16.msra.mxu0 %v6021_v29 }
 0xa59   : > { %6029 = vmatprep.subr.bf16.mxu0 %v6201_v12 }
 0xa5b   : > { %5759 = vmatmul.mubr.msk.f32.vlgmr.msra.gmra.mrb[38].mxu0 %vm601_vm0, %v6835_v42 }
 0xa5c   : > { %6031 = vmatpush3.bf16.msra.mxu0 %v6030_v32  ;;  %5780 = vmatprep.mubr.msk.f32.mxu0 %vm6202_vm1, %v6203_v20 }
 0xa5d   : > { %6032 = vmatprep.subr.bf16.mxu0 %v6201_v12 }
 0xa60   : > { %6034 = vmatpush3.bf16.msra.mxu0 %v6033_v35 }
 0xa61   : > { %5793 = vmatprep.subr.mxu0 %v6203_v20 }
 0xa63   : > { %5781 = vmatmul.mubr.msk.f32.vlgmr.msra.gmra.mrb[40].mxu0 %vm601_vm0, %v6835_v42 }
 0xa64   : > { %5795 = vmatprep.mubr.msk.f32.mxu0 %vm6202_vm1, %v6203_v20 }
 0xb06   : > { %v2908_v0 = vpop.f32.mrb[28].mxu0  ;;  %v3048_v37 = vpop.f32.mrb[24].mxu1 }
 0xb07   : > { %v5661_v38 = vpop.f32.mrb[29].mxu0  ;;  %v5683_v39 = vpop.f32.mrb[25].mxu1  ;;  %v2909_v46 = vadd.f32 %v5119_v43, %v2908_v0  ;;  %v3049_v54 = vadd.f32 %v5121_v50, %v3048_v37 }
 0xb0e   : > { %v2978_v40 = vpop.f32.mrb[30].mxu0  ;;  %v3234_v41 = vpop.f32.mrb[26].mxu1 }
 0xb0f   : > { %v3235_v44 = vadd.f32 %v5147_v36, %v3234_v41  ;;  %v5672_v45 = vpop.f32.mrb[31].mxu0  ;;  %v5705_v42 = vpop.f32.mrb[27].mxu1  ;;  %v2979_v1 = vadd.f32 %v5120_v59, %v2978_v40 }
 0xb11   : > { %5784 = vmatpush3.xpose.msk.msra.mxu1 %vm1605_vm2, %v3235_v44 }
 0xb12   : > { %5788 = vmatprep.subr.mxu1 %v6203_v20 }
 0xb14   : > { %5786 = vmatmul.mubr.msk.f32.vlgmr.msra.gmra.mrb[34].mxu1 %vm1605_vm2, %v2909_v46 }
 0xb15   : > { %5790 = vmatprep.mubr.msk.f32.mxu1 %vm6202_vm1, %v6203_v20 }
 0xb16   : > { %v3118_v48 = vpop.f32.mrb[32].mxu0  ;;  %v3374_v49 = vpop.f32.mrb[28].mxu1 }
 0xb17   : > { %v3375_v51 = vadd.f32 %v5149_v47, %v3374_v49  ;;  %v5694_v52 = vpop.f32.mrb[33].mxu0  ;;  %v5727_v53 = vpop.f32.mrb[29].mxu1  ;;  %v3119_v10 = vadd.f32 %v5122_v5, %v3118_v48  ;;  %v5197_v5 = vld [vmem:[%s7253_s9 + $0x30] sm:$0xff] }
 0xb18   : > { %v5177_v52 = vld [vmem:[%s7252_s8 + $0x6] ss:$0 sm:$0xff] }
 0xb19   : > { %5794 = vmatpush3.xpose.msk.msra.mxu0 %vm1605_vm2, %v3375_v51 }
 0xb1a   : > { %5803 = vmatprep.subr.mxu0 %v6203_v20 }
 0xb1c   : > { %5796 = vmatmul.mubr.msk.f32.vlgmr.msra.gmra.mrb[42].mxu0 %vm1605_vm2, %v3049_v54 }
 0xb1d   : > { %5805 = vmatprep.mubr.msk.f32.mxu0 %vm6202_vm1, %v6203_v20 }
 0xb1e   : > { %v3304_v57 = vpop.f32.mrb[34].mxu0  ;;  %v3560_v58 = vpop.f32.mrb[30].mxu1 }
 0xb1f   : > { %v3305_v60 = vadd.f32 %v5148_v55, %v3304_v57  ;;  %v3561_v61 = vadd.f32 %v5175_v56, %v3560_v58  ;;  %v5716_v62 = vpop.f32.mrb[35].mxu0  ;;  %v5749_v63 = vpop.f32.mrb[31].mxu1 }
 0xb21   : > { %5789 = vmatpush3.xpose.msk.msra.mxu1 %vm1605_vm2, %v3305_v60  ;;  %5804 = vmatpush3.msra.mxu0 %v3561_v61  ;;  %v5178_v60 = vld [vmem:[%s7252_s8 + $0x7] ss:$0 sm:$0xff] }
 0xb22   : > { %5798 = vmatprep.subr.mxu1 %v6203_v20  ;;  %5813 = vmatprep.subr.mxu0 %v6203_v20 }
 0xb24   : > { %5791 = vmatmul.mubr.msk.f32.vlgmr.msra.gmra.mrb[36].mxu1 %vm1605_vm2, %v2979_v1 }
 0xb25   : > { %5800 = vmatprep.mubr.msk.f32.mxu1 %vm6202_vm1, %v6203_v20 }
 0xb26   : > { %v3444_v3 = vpop.f32.mrb[36].mxu0  ;;  %v7050_v4 = vpop.f32.mrb[32].mxu1 }
 0xb27   : > { %v3445_v6 = vadd.f32 %v5150_v2, %v3444_v3  ;;  %v5738_v8 = vpop.f32.mrb[37].mxu0  ;;  %v5771_v9 = vpop.f32.mrb[33].mxu1  ;;  %v3701_v55 = vadd.f32 %v5177_v52, %v7050_v4  ;;  %v5195_v3 = vld [vmem:[%s7253_s9 + $0x20] sm:$0xff]  ;;  %v5196_v4 = vld [vmem:[%s7253_s9 + $0x28] sm:$0xff] }
 0xb28   : > { %v5221_v52 = vld [vmem:[%s7259_s15 + $0x68] sm:$0xff] }
 0xb29   : > { %5799 = vmatpush3.xpose.msk.msra.mxu1 %vm1605_vm2, %v3445_v6 }
 0xb2a   : > { %5808 = vmatprep.subr.mxu1 %v6203_v20 }
 0xb2c   : > { %5801 = vmatmul.mubr.msk.f32.vlgmr.msra.gmra.mrb[38].mxu1 %vm1605_vm2, %v3119_v10 }
 0xb2d   : > { %5810 = vmatprep.mubr.msk.f32.mxu1 %vm6202_vm1, %v6203_v20 }
 0xb2e   : > { %v3630_v13 = vpop.f32.mrb[38].mxu0 }
 0xb2f   : > { %v3631_v14 = vadd.f32 %v5176_v11, %v3630_v13  ;;  %v5760_v15 = vpop.f32.mrb[39].mxu0  ;;  %v5198_v11 = vld [vmem:[%s7253_s9 + $0x38] sm:$0xff] }
 0xb31   : > { %5809 = vmatpush3.msra.mxu1 %v3631_v14 }
 0xb32   : > { %5818 = vmatprep.subr.mxu1 %v6203_v20 }
 0xb36   : > { %v7064_v16 = vpop.f32.mrb[40].mxu0 }
 0xb37   : > { %v5782_v17 = vpop.f32.mrb[41].mxu0  ;;  %v3771_v63 = vadd.f32 %v5178_v60, %v7064_v16  ;;  %v5208_v60 = vld [vmem:[%s7256_s12 + $0x1] ss:$0 sm:$0xff] }
 0xbe7   : > { %v3846_v18 = vpop.f32.mrb[34].mxu1 }
 0xbe8   : > { %v5787_v19 = vpop.f32.mrb[35].mxu1  ;;  %v4078_v21 = vsel %vm1605_vm2, %v3846_v18, -inf }
 0xbe9   : > { %4079 = vmax.xlane.f32.xlu0 %v4078_v21 }
 0xbef   : > { %v3998_v22 = vpop.f32.mrb[42].mxu0 }
 0xbf0   : > { %v5797_v23 = vpop.f32.mrb[43].mxu0  ;;  %v4084_v24 = vsel %vm1605_vm2, %v3998_v22, -inf }
 0xbf1   : > { %4085 = vmax.xlane.f32.xlu0 %v4084_v24 }
 0xbf7   : > { %v3922_v25 = vpop.f32.mrb[36].mxu1 }
 0xbf8   : > { %v5792_v26 = vpop.f32.mrb[37].mxu1  ;;  %v4081_v27 = vsel %vm1605_vm2, %v3922_v25, -inf }
 0xbf9   : > { %4082 = vmax.xlane.f32.xlu1 %v4081_v27 }
 0xbff   : > { %v4074_v28 = vpop.f32.mrb[38].mxu1 }
 0xc00   : > { %v5802_v29 = vpop.f32.mrb[39].mxu1  ;;  %v4087_v30 = vsel %vm1605_vm2, %v4074_v28, -inf }
 0xc01   : > { %4088 = vmax.xlane.f32.xlu1 %v4087_v30 }
 0xc76   : > { %v4080_v31 = vpop.xlane.xlu0 %4079 }
 0xc77   : > { %v4090_v32 = vsub.f32 %v3846_v18, %v4080_v31 }
 0xc79   : > { %v4094_v33 = vmul.f32 1.442695, %v4090_v32 }
 0xc7b   : > { %6117 = vpow2.f32 %v4094_v33 }
 0xc7e   : > { %v4086_v34 = vpop.xlane.xlu0 %4085 }
 0xc7f   : > { %v4092_v35 = vsub.f32 %v3998_v22, %v4086_v34 }
 0xc81   : > { %v4098_v0 = vmul.f32 1.442695, %v4092_v35 }
 0xc83   : > { %6119 = vpow2.f32 %v4098_v0 }
 0xc85   : > { %v6118_v37 = vpop.eup %6117 }
 0xc86   : > { %v4083_v38 = vpop.xlane.xlu1 %4082  ;;  %v4102_v39 = vsel %vm1605_vm2, %v6118_v37, 0.0 }
 0xc87   : > { %v4091_v36 = vsub.f32 %v3922_v25, %v4083_v38  ;;  %4103 = vadd.xlane.f32.xlu0 %v4102_v39 }
 0xc89   : > { %v4096_v40 = vmul.f32 1.442695, %v4091_v36 }
 0xc8b   : > { %6121 = vpow2.f32 %v4096_v40  ;;  %v5209_v40 = vld [vmem:[%s7257_s13 + $0x20] sm:$0xff] }
 0xc8d   : > { %v6120_v41 = vpop.eup %6119 }
 0xc8e   : > { %v4089_v43 = vpop.xlane.xlu1 %4088  ;;  %v4108_v44 = vsel %vm1605_vm2, %v6120_v41, 0.0 }
 0xc8f   : > { %v4093_v45 = vsub.f32 %v4074_v28, %v4089_v43  ;;  %4109 = vadd.xlane.f32.xlu0 %v4108_v44  ;;  %v5212_v44 = vld [vmem:[%s7257_s13 + $0x38] sm:$0xff] }
 0xc91   : > { %v4100_v42 = vmul.f32 1.442695, %v4093_v45 }
 0xc93   : > { %6123 = vpow2.f32 %v4100_v42  ;;  %v5216_v42 = vld [vmem:[%s7259_s15 + $0x40] sm:$0xff] }
 0xc95   : > { %v6122_v46 = vpop.eup %6121 }
 0xc96   : > { %v4105_v47 = vsel %vm1605_vm2, %v6122_v46, 0.0 }
 0xc97   : > { %4106 = vadd.xlane.f32.xlu1 %v4105_v47  ;;  %v5218_v47 = vld [vmem:[%s7259_s15 + $0x50] sm:$0xff] }
 0xc9d   : > { %v6124_v48 = vpop.eup %6123 }
 0xc9e   : > { %v4111_v49 = vsel %vm1605_vm2, %v6124_v48, 0.0 }
 0xc9f   : > { %4112 = vadd.xlane.f32.xlu1 %v4111_v49  ;;  %v5219_v49 = vld [vmem:[%s7259_s15 + $0x58] sm:$0xff] }
 0xd14   : > { %v4104_v50 = vpop.xlane.xlu0 %4103 }
 0xd15   : > { %6125 = vrcp.f32 %v4104_v50  ;;  %v6045_v50 = vpack.c.bf16 %v5219_v49, %v5218_v47 }
 0xd1c   : > { %v4110_v51 = vpop.xlane.xlu0 %4109 }
 0xd1d   : > { %6127 = vrcp.f32 %v4110_v51  ;;  %v5220_v51 = vld [vmem:[%s7259_s15 + $0x60] sm:$0xff] }
 0xd1f   : > { %v6126_v53 = vpop.eup %6125 }
 0xd20   : > { %v4118_v54 = vmul.f32 %v6126_v53, %v6118_v37  ;;  %v6048_v53 = vpack.c.bf16 %v5221_v52, %v5220_v51 }
 0xd22   : > { %5806 = vmatmul.mubr.msk.f32.vlgmr.msra.gmra.mrb[44].mxu0 %vm1605_vm2, %v4118_v54 }
 0xd23   : > { %5814 = vmatpush3.msra.mxu0 %v3701_v55  ;;  %5815 = vmatprep.mubr.msk.f32.mxu0 %vm6202_vm1, %v6203_v20 }
 0xd24   : > { %v4107_v56 = vpop.xlane.xlu1 %4106  ;;  %5823 = vmatprep.subr.mxu0 %v6203_v20 }
 0xd25   : > { %6129 = vrcp.f32 %v4107_v56 }
 0xd27   : > { %v6128_v57 = vpop.eup %6127 }
 0xd28   : > { %v4120_v58 = vmul.f32 %v6128_v57, %v6120_v41  ;;  %v5210_v41 = vld [vmem:[%s7257_s13 + $0x28] sm:$0xff] }
 0xd29   : > { %v6036_v43 = vpack.c.bf16 %v5210_v41, %v5209_v40 }
 0xd2a   : > { %5816 = vmatmul.mubr.msk.f32.vlgmr.msra.gmra.mrb[46].mxu0 %vm1605_vm2, %v4120_v58  ;;  %v5207_v58 = vld [vmem:[%s7255_s11 + $0x1] ss:$0 sm:$0xff] }
 0xd2b   : > { %5825 = vmatprep.mubr.msk.f32.mxu0 %vm6202_vm1, %v6203_v20  ;;  %5824 = vmatpush3.msra.mxu0 %v5195_v3 }
 0xd2c   : > { %v4113_v59 = vpop.xlane.xlu1 %4112  ;;  %5833 = vmatprep.subr.mxu0 %v6203_v20 }
 0xd2d   : > { %6131 = vrcp.f32 %v4113_v59 }
 0xd2f   : > { %v6130_v61 = vpop.eup %6129 }
 0xd30   : > { %v4119_v62 = vmul.f32 %v6130_v61, %v6122_v46  ;;  %v5217_v46 = vld [vmem:[%s7259_s15 + $0x48] sm:$0xff] }
 0xd32   : > { %5811 = vmatmul.mubr.msk.f32.vlgmr.msra.gmra.mrb[40].mxu1 %vm1605_vm2, %v4119_v62 }
 0xd33   : > { %5819 = vmatpush3.msra.mxu1 %v3771_v63  ;;  %5820 = vmatprep.mubr.msk.f32.mxu1 %vm6202_vm1, %v6203_v20  ;;  %v5223_v63 = vld [vmem:[%s7259_s15 + $0x78] sm:$0xff] }
 0xd34   : > { %5828 = vmatprep.subr.mxu1 %v6203_v20 }
 0xd37   : > { %v6132_v1 = vpop.eup %6131 }
 0xd38   : > { %v4121_v2 = vmul.f32 %v6132_v1, %v6124_v48  ;;  %v6042_v48 = vpack.c.bf16 %v5217_v46, %v5216_v42 }
 0xd3a   : > { %5821 = vmatmul.mubr.msk.f32.vlgmr.msra.gmra.mrb[42].mxu1 %vm1605_vm2, %v4121_v2  ;;  %v5214_v2 = vld [vmem:[%s7258_s14 + $0x1] ss:$0 sm:$0xff] }
 0xd3b   : > { %5830 = vmatprep.mubr.msk.f32.mxu1 %vm6202_vm1, %v6203_v20  ;;  %5829 = vmatpush3.msra.mxu1 %v5196_v4 }
 0xd3c   : > { %5838 = vmatprep.subr.mxu1 %v6203_v20 }
 0xdf5   : > { %v4191_v6 = vpop.f32.mrb[44].mxu0 }
 0xdf6   : > { %v5807_v8 = vpop.f32.mrb[45].mxu0  ;;  %5826 = vmatmul.mubr.msk.f32.vlgmr.msra.gmra.mrb[48].mxu0 %vm1605_vm2, %v4191_v6 }
 0xdf7   : > { %5834 = vmatpush3.msra.mxu0 %v5197_v5  ;;  %5835 = vmatprep.mubr.msk.f32.mxu0 %vm6202_vm1, %v6203_v20  ;;  %v5225_v8 = vld [vmem:[%s7260_s16 + $0x1] ss:$0 sm:$0xff] }
 0xdf8   : > { %6035 = vmatprep.subr.bf16.mxu0 %v6201_v12 }
 0xdfd   : > { %v4337_v9 = vpop.f32.mrb[46].mxu0 }
 0xdfe   : > { %v5817_v10 = vpop.f32.mrb[47].mxu0  ;;  %5836 = vmatmul.mubr.msk.f32.vlgmr.msra.gmra.mrb[50].mxu0 %vm1605_vm2, %v4337_v9 }
 0xdff   : > { %5851 = vmatprep.mubr.msk.f32.mxu0 %vm6202_vm1, %v6203_v20  ;;  %6037 = vmatpush3.bf16.msra.mxu0 %v6036_v43 }
 0xe00   : > { %6038 = vmatprep.subr.bf16.mxu0 %v6201_v12 }
 0xe05   : > { %v4264_v13 = vpop.f32.mrb[40].mxu1 }
 0xe06   : > { %v5812_v14 = vpop.f32.mrb[41].mxu1  ;;  %5831 = vmatmul.mubr.msk.f32.vlgmr.msra.gmra.mrb[44].mxu1 %vm1605_vm2, %v4264_v13 }
 0xe07   : > { %5839 = vmatpush3.msra.mxu1 %v5198_v11  ;;  %5840 = vmatprep.mubr.msk.f32.mxu1 %vm6202_vm1, %v6203_v20 }
 0xe08   : > { %6041 = vmatprep.subr.bf16.mxu1 %v6201_v12 }
 0xe0d   : > { %v4410_v15 = vpop.f32.mrb[42].mxu1 }
 0xe0e   : > { %v5822_v16 = vpop.f32.mrb[43].mxu1  ;;  %5841 = vmatmul.mubr.msk.f32.vlgmr.msra.gmra.mrb[46].mxu1 %vm1605_vm2, %v4410_v15 }
 0xe0f   : > { %5870 = vmatprep.mubr.msk.f32.mxu1 %vm6202_vm1, %v6203_v20  ;;  %v5204_v20 = vld [vmem:[%s7254_s10 + $0x1] ss:$0 sm:$0xff]  ;;  %6043 = vmatpush3.bf16.msra.mxu1 %v6042_v48 }
 0xe10   : > { %6044 = vmatprep.subr.bf16.mxu1 %v6201_v12 }
 0xe13   : > { %6046 = vmatpush3.bf16.msra.mxu1 %v6045_v50 }
 0xe14   : > { %6047 = vmatprep.subr.bf16.mxu1 %v6201_v12 }
 0xe17   : > { %6049 = vmatpush3.bf16.msra.mxu1 %v6048_v53 }
 0xe18   : > { %6050 = vmatprep.subr.bf16.mxu1 %v6201_v12  ;;  %v5222_v12 = vld [vmem:[%s7259_s15 + $0x70] sm:$0xff] }
 0xe19   : > { %v6051_v1 = vpack.c.bf16 %v5223_v63, %v5222_v12 }
 0xe1b   : > { %6052 = vmatpush3.bf16.msra.mxu1 %v6051_v1 }
 0xec9   : > { %v4488_v17 = vpop.f32.mrb[48].mxu0 }
 0xeca   : > { %v5827_v18 = vpop.f32.mrb[49].mxu0  ;;  %v4711_v23 = vsel %vm601_vm0, %v4488_v17, 0.0 }
 0xed1   : > { %v4634_v19 = vpop.f32.mrb[50].mxu0 }
 0xed2   : > { %v5837_v21 = vpop.f32.mrb[51].mxu0  ;;  %v4714_v27 = vsel %vm601_vm0, %v4634_v19, 0.0 }
 0xed9   : > { %v4561_v22 = vpop.f32.mrb[44].mxu1 }
 0xeda   : > { %v4712_v24 = vsel %vm601_vm0, %v4561_v22, 0.0  ;;  %v5832_v25 = vpop.f32.mrb[45].mxu1 }
 0xedb   : > { %v4713_v26 = vadd.f32 %v4712_v24, %v4711_v23  ;;  %v5227_v25 = vld [vmem:[%s7261_s17] ss:$0 sm:$0xff] }
 0xedd   : > { %v4715_v28 = vadd.f32 %v4714_v27, %v4713_v26  ;;  %v5228_v27 = vld [vmem:[%s7299_s26] ss:$0 sm:$0xff] }
 0xee1   : > { %v4707_v29 = vpop.f32.mrb[46].mxu1 }
 0xee2   : > { %v4716_v30 = vsel %vm601_vm0, %v4707_v29, 0.0  ;;  %v5842_v31 = vpop.f32.mrb[47].mxu1 }
 0xee3   : > { %v4717_v32 = vadd.f32 %v4716_v30, %v4715_v28 }
 0xee5   : > { %v4726_v33 = vadd.f32 %v5204_v20, %v4717_v32 }
 0xee7   : > { %v4727_v34 = vadd.f32 %v4726_v33, %v6780_v7  ;;  %v5211_v7 = vld [vmem:[%s7257_s13 + $0x30] sm:$0xff] }
 0xee8   : > { %v6039_v45 = vpack.c.bf16 %v5212_v44, %v5211_v7 }
 0xee9   : > { %v4732_v35 = vsel %vm601_vm0, %v4727_v34, 0.0 }
 0xeea   : > { %4733 = vadd.xlane.f32.xlu0 %v4732_v35  ;;  %6040 = vmatpush3.bf16.msra.mxu0 %v6039_v45 }
 0xf77   : > { %v4734_v0 = vpop.xlane.xlu0 %4733 }
 0xf78   : > { %v4735_v37 = vmul.f32 0.03125, %v4734_v0 }
 0xf7a   : > { %v4736_v38 = vsub.f32 %v4727_v34, %v4735_v37 }
 0xf7c   : > { %v4737_v39 = vmul.f32 %v4736_v38, %v4736_v38 }
 0xf7e   : > { %v4738_v36 = vsel %vm601_vm0, %v4737_v39, 0.0 }
 0xf7f   : > { %4739 = vadd.xlane.f32.xlu1 %v4738_v36 }
0x100c   : > { %v4740_v54 = vpop.xlane.xlu1 %4739 }
0x100d   : > { %v4741_v55 = vmul.f32 0.03125, %v4740_v54 }
0x100f   : > { %v4742_v56 = vadd.f32 1e-06, %v4741_v55 }
0x1011   : > { %6133 = vrsqrt.f32 %v4742_v56 }
0x101b   : > { %v6134_v57 = vpop.eup %6133 }
0x101c   : > { %v4744_v59 = vmul.f32 %v6134_v57, %v4736_v38 }
0x101e   : > { %v4751_v61 = vmul.f32 %v5207_v58, %v4744_v59 }
0x1020   : > { %v4758_v62 = vadd.f32 %v5208_v60, %v4751_v61 }
0x1022   : > { %5852 = vmatmul.mubr.msk.f32.vlgmr.msra.gmra.mrb[52].mxu0 %vm601_vm0, %v4758_v62 }
0x10f5   : > { %v4841_v3 = vpop.f32.mrb[52].mxu0 }
0x10f6   : > { %v4842_v4 = vadd.f32 %v5214_v2, %v4841_v3  ;;  %v5853_v5 = vpop.f32.mrb[53].mxu0 }
0x10f8   : > { %v4845_v6 = vmax.f32 %v4842_v4, 0.0 }
0x10fa   : > { %5871 = vmatmul.mubr.msk.f32.vlgmr.msra.gmra.mrb[48].mxu1 %vm2687_vm3, %v4845_v6 }
0x11cd   : > { %v4932_v9 = vpop.f32.mrb[48].mxu1 }
0x11ce   : > { %v4933_v10 = vadd.f32 %v5225_v8, %v4932_v9  ;;  %v5872_v11 = vpop.f32.mrb[49].mxu1 }
0x11d0   : > { %v4936_v13 = vadd.f32 %v4933_v10, %v4727_v34 }
0x11d2   : > { %v4939_v14 = vsel %vm601_vm0, %v4936_v13, 0.0 }
0x11d3   : > { %4940 = vadd.xlane.f32.xlu0 %v4939_v14 }
0x1260   : > { %v4941_v15 = vpop.xlane.xlu0 %4940 }
0x1261   : > { %v4942_v16 = vmul.f32 0.03125, %v4941_v15 }
0x1263   : > { %v4943_v17 = vsub.f32 %v4936_v13, %v4942_v16 }
0x1265   : > { %v4944_v18 = vmul.f32 %v4943_v17, %v4943_v17 }
0x1267   : > { %v4945_v19 = vsel %vm601_vm0, %v4944_v18, 0.0 }
0x1268   : > { %4946 = vadd.xlane.f32.xlu1 %v4945_v19 }
0x12f5   : > { %v4947_v21 = vpop.xlane.xlu1 %4946 }
0x12f6   : > { %v4948_v22 = vmul.f32 0.03125, %v4947_v21 }
0x12f8   : > { %v4949_v23 = vadd.f32 1e-06, %v4948_v22 }
0x12fa   : > { %6135 = vrsqrt.f32 %v4949_v23 }
0x1304   : > { %v6136_v24 = vpop.eup %6135 }
0x1305   : > { %v4951_v26 = vmul.f32 %v6136_v24, %v4943_v17 }
0x1307   : > { %v4958_v28 = vmul.f32 %v5227_v25, %v4951_v26 }
0x1309   : > { %v4965_v29 = vadd.f32 %v5228_v27, %v4958_v28 }
0x130b   : > { %4966 = vst.msk [vmem:[%s593_s22] sm:$0xff] %vm601_vm0, %v4965_v29 }
0x130c   : > { %6150 = shalt.err (!%p6147_p3)
}
0x130d   : > { %s6151_s2 = scalar_lea.hbm %s7201_s5, 128  ;;  %s6155_s26 = scalar_lea.hbm %s7300_s4, 256 }
0x130e   : > { %p6152_p4 = scmp.ne.s32.totalorder %s7201_s5, %s6151_s2  ;;  %p6156_p9 = scmp.lt.u32.totalorder %s7201_s5, %s7300_s4 }
0x130f   : > { %p6157_p10 = scmp.lt.u32.totalorder %s6155_s26, %s6151_s2  ;;  %p6159_p12 = scmp.lt.u32.totalorder %s6151_s2, %s7201_s5 }
0x1310   : > { %p6153_p7 = pnand %p6152_p4, %p6343_p5 }
0x1311   : > { %p6158_p11 = por %p6157_p10, %p6156_p9 }
0x1312   : > { %p6154_p8 = pneg %p6153_p7 }
0x1313   : > { %p6160_p13 = por %p6159_p12, %p6158_p11 }
0x1315   : > { %p6161_p0 = pnand %p6160_p13, %p6154_p8 }
0x1317   : > { %6164 = shalt.err (!%p6161_p0)
}
0x1318   : > { %6053 = dma.vmem_to_hbm [thread:$0]  (%p6343_p5), %s7203_s0, 128, %s7201_s5, %s4968_s24  }
0x1319 PF: > { %s7301_s21 = sld [smem:[#allocation7_spill]]  ;;  %s7302_s20 = sld [smem:[#allocation5_spill]] }
0x131f   : > { %p6059_p1 = scmp.ge.s32.totalorder %s7301_s21, 2  ;;  %s4993_s23 = sand.u32 1, %s7302_s20  }
0x1320   : > { %s4994_s27 = scalar_lea.sflag [#allocation3], %s4993_s23 }
0x1321   : > { %p6056_p2 = pnand %p6059_p1, %p6347_p6 }
0x1323   : > { %6182 = dma.done.wait (!%p6056_p2), %s4994_s27, 128  }
0x1324   : > { %6184 = vsyncadd (!%p6056_p2), %s4994_s27, 4294967168  ;;  %s7304_s21 = sld [smem:[#allocation8_spill]]  ;;  %s7305_s2 = sld [smem:[#allocation6_spill]] }
0x1325   : > { %s7306_s20 = sld [smem:[#allocation9_spill]]  ;;  %s7307_s0 = smov %s6191_s30 }
0x132a   : > { %p29_p3 = scmp.ge.s32.totalorder %s7304_s21, 4   ;;  %s7308_s30 = smov %s7305_s2 }
0x132c   :  { %31 = sbr.rel (!%p29_p3) target bundleno = 12 (0xc), region = 147 }
0x1333   :  { %4999 = vsyncpa [#allocation3], 1 }
0x1334   :  { %5001 = vsyncpa [#allocation3 + $0x1], 1 }

</bundles_post_ra>
